<compile_context>
chip_gen: v6e
topology: v6e:2x2x1
jax: 0.10.0
libtpu: 0.0.40
codegen_flags: <defaults>
</compile_context>

<pallas_src>
import jax
import jax.numpy as jnp
from jax.experimental import pallas as pl
from jax.experimental.pallas import tpu as pltpu

# ---- model dimensions ----
B = 2          # batch
AUDIO_T = 16   # audio time steps
AUDIO_C = 64   # audio input channels
TEXT_DIM = 768
VIDEO_DIM = 512
PROJ = 128
FUSED = 256
HID = 64
N_EMO = 7
N_SENT = 3
OUT_PAD = 128          # lane-dense padded logits width
BN_EPS = 1e-5

K = 3                  # conv kernel size
L1 = AUDIO_T - K + 1   # 14 after Conv1d(k=3)
LP = L1 // 2           # 7  after MaxPool1d(2)
L2 = LP - K + 1        # 5  after second Conv1d(k=3)
T_HALF = AUDIO_T // 2  # 8  per-batch row stride after pooling

F32 = jnp.float32
BF16 = jnp.bfloat16

# ---- packed parameter blob layout (row offsets) ----
# weight blob A: bf16, lane width 256
WA_WTF = 0                       # (768,256) text proj folded into fusion block
WA_WFV = WA_WTF + TEXT_DIM       # (128,256) fusion block for video features
WA_WFA = WA_WFV + PROJ           # (128,256) fusion block for audio features
WA_ROWS = WA_WFA + PROJ          # 1024
# weight blob B: bf16, lane width 128
WB_WV = 0                        # (512,128) video head Linear
WB_W1 = WB_WV + VIDEO_DIM        # 3 x (64, lanes 0:64) conv1 taps (BN1 folded)
WB_W2 = WB_W1 + K * AUDIO_C      # 3 x (64,128) conv2 taps (BN2 folded)
WB_WP = WB_W2 + K * AUDIO_C      # (128,128) audio projection
WB_WH1 = WB_WP + PROJ            # (256,128) fused heads layer 1
WB_WH2 = WB_WH1 + FUSED          # (128,128) fused heads layer 2 (lane padded)
WB_ROWS = WB_WH2 + 2 * HID       # 1408
# f32 blob rows (lane width 256): biases + the block-averaging pooling matrix
BI_B1, BI_B2, BI_BP, BI_BV, BI_BFU, BI_BH1, BI_BH2 = range(7)
BI_AVG = 7                       # rows [7 : 7+B): AdaptiveAvgPool selection matrix


def multimodal_kernel(text_ref, video_ref, audio_ref,
                      wa_ref, wb_ref, bias_ref,
                      out_ref, c1_scr):
    batch = text_ref.shape[0]
    nr1 = batch * AUDIO_T        # conv1 rows, per-batch stride 16
    nr2 = batch * T_HALF         # conv2 rows, per-batch stride 8

    def dot(x, w):
        # bf16 MXU matmul with f32 accumulation
        return jnp.dot(x.astype(BF16), w, preferred_element_type=F32)

    # ---- VideoEncoder head: Linear(512->128) + ReLU (+Dropout = id) ----
    video_feat = jnp.maximum(
        dot(video_ref[...], wb_ref[WB_WV:WB_WV + VIDEO_DIM, :])
        + bias_ref[BI_BV:BI_BV + 1, :PROJ], 0.0)                         # (B,128)

    # ---- AudioEncoder conv stack, batched across B ----
    # Conv1d(64->64, k=3) + folded BN1 + ReLU: K accumulated per-tap dots.
    # audio_ref is (B*16 + 8, 64) with 8 zero rows of tail padding so tap
    # windows are plain in-bounds sublane slices; rows t=14,15 of each 16-row
    # batch block are unused (finite) garbage.
    acc1 = jnp.zeros((nr1, AUDIO_C), F32)
    for k in range(K):
        w1k = wb_ref[WB_W1 + AUDIO_C * k: WB_W1 + AUDIO_C * (k + 1), 0:AUDIO_C]
        acc1 = acc1 + dot(audio_ref[k:k + nr1, :], w1k)
    c1 = jnp.maximum(acc1 + bias_ref[BI_B1:BI_B1 + 1, 0:AUDIO_C], 0.0)   # (B*16,64)

    # Stage conv1 output once (aligned batched store) and zero the tail so the
    # shifted strided reads below never touch uninitialized VMEM.
    c1_scr[0:nr1, :] = c1
    c1_scr[nr1:nr1 + 8, :] = jnp.zeros((8, AUDIO_C), F32)

    # Conv1d(64->128, k=3) + folded BN2 + ReLU, with MaxPool1d(2) fused into
    # the stride-2 window reads of each tap.  Valid rows: b*8 + t, t in [0,5).
    acc2 = jnp.zeros((nr2, PROJ), F32)
    for k in range(K):
        win = jnp.maximum(c1_scr[pl.ds(2 * k, nr2, stride=2), :],
                          c1_scr[pl.ds(2 * k + 1, nr2, stride=2), :])    # (B*8,64)
        w2k = wb_ref[WB_W2 + AUDIO_C * k: WB_W2 + AUDIO_C * (k + 1), :]
        acc2 = acc2 + dot(win, w2k)
    c2 = jnp.maximum(acc2 + bias_ref[BI_B2:BI_B2 + 1, 0:PROJ], 0.0)      # (B*8,128)

    # AdaptiveAvgPool1d(1) + squeeze(-1): one constant block-averaging matmul.
    avg = bias_ref[BI_AVG:BI_AVG + batch, 0:nr2]                         # (B, B*8)
    audio_pooled = dot(avg, c2.astype(BF16))                             # (B,128)

    # audio projection: Linear(128->128) + ReLU (+Dropout = id)
    audio_feat = jnp.maximum(
        dot(audio_pooled, wb_ref[WB_WP:WB_WP + PROJ, :])
        + bias_ref[BI_BP:BI_BP + 1, :PROJ], 0.0)                         # (B,128)

    # ---- fusion: block-split matmuls (no (B,384) concat) ----
    # text branch (Linear 768->128, no ReLU in the reference) pre-folded into wtf.
    fused = (dot(text_ref[...], wa_ref[WA_WTF:WA_WTF + TEXT_DIM, :])
             + dot(video_feat, wa_ref[WA_WFV:WA_WFV + PROJ, :])
             + dot(audio_feat, wa_ref[WA_WFA:WA_WFA + PROJ, :])
             + bias_ref[BI_BFU:BI_BFU + 1, :])
    fused = jnp.maximum(fused, 0.0)          # folded BN(eval) + ReLU (+Dropout = id)

    # ---- fused emotion(7) + sentiment(3) heads, lane-dense (B,128) store ----
    h = jnp.maximum(
        dot(fused, wb_ref[WB_WH1:WB_WH1 + FUSED, :])
        + bias_ref[BI_BH1:BI_BH1 + 1, :PROJ], 0.0)                       # (B,128)
    out_ref[...] = (dot(h, wb_ref[WB_WH2:WB_WH2 + 2 * HID, :])
                    + bias_ref[BI_BH2:BI_BH2 + 1, :OUT_PAD])             # (B,128)


def make_params(key):
    """Synthetic parameters; BN / text-proj / head fusion folded and packed host-side.

    With a real checkpoint: permute torch Conv1d weights (Cout,Cin,K)->(K,Cin,Cout),
    transpose Linear weights to (in,out), and use the checkpoint's BN running stats
    in place of the default (mean=0, var=1) used here.
    """
    ks = list(jax.random.split(key, 16))

    def w(k, shape, scale=0.05):
        return (scale * jax.random.normal(k, shape)).astype(F32)

    def bn_scale_shift(c):
        gamma, beta = jnp.ones((c,), F32), jnp.zeros((c,), F32)
        rmean, rvar = jnp.zeros((c,), F32), jnp.ones((c,), F32)
        s = gamma / jnp.sqrt(rvar + BN_EPS)
        return s, beta - rmean * s

    # raw parameters, (in, out) / (k, in, out) layout
    wt, bt = w(ks[0], (TEXT_DIM, PROJ)), w(ks[1], (1, PROJ))        # text projection
    wv, bv = w(ks[2], (VIDEO_DIM, PROJ)), w(ks[3], (1, PROJ))       # video fc head
    w1, b1 = w(ks[4], (K, AUDIO_C, 64)), w(ks[5], (1, 64))          # Conv1d(64,64,3)
    w2, b2 = w(ks[6], (K, 64, 128)), w(ks[7], (1, 128))             # Conv1d(64,128,3)
    wp, bp = w(ks[8], (PROJ, PROJ)), w(ks[9], (1, PROJ))            # audio projection
    wf, bf = w(ks[10], (3 * PROJ, FUSED)), w(ks[11], (1, FUSED))    # fusion Linear
    we1, be1 = w(ks[12], (FUSED, HID)), w(ks[13], (1, HID))
    we2, be2 = w(ks[14], (HID, N_EMO)), jnp.zeros((1, N_EMO), F32)
    ws1, bs1 = w(ks[15], (FUSED, HID)), jnp.zeros((1, HID), F32)
    ws2, bs2 = w(jax.random.PRNGKey(1), (HID, N_SENT)), jnp.zeros((1, N_SENT), F32)

    # fold eval-mode BatchNorms into the preceding conv/linear (exact algebra)
    s1, h1 = bn_scale_shift(64)
    w1f = w1 * s1                       # (K,64,64) per-tap blocks
    b1f = b1 * s1 + h1
    s2, h2 = bn_scale_shift(128)
    w2f = w2 * s2                       # (K,64,128)
    b2f = b2 * s2 + h2
    sf, hf = bn_scale_shift(FUSED)
    wf_bn = wf * sf
    bf_bn = bf * sf + hf
    wf_t, wf_v, wf_a = wf_bn[:PROJ], wf_bn[PROJ:2 * PROJ], wf_bn[2 * PROJ:]
    # text projection is a bare Linear (no ReLU) -> fold into the fusion matmul
    wtf = wt @ wf_t                     # (768,256)
    bfu = bf_bn + bt @ wf_t             # (1,256)

    # fuse the two classifier heads; pad layer-2 output to 128 lanes (lane-dense store)
    wh1 = jnp.concatenate([we1, ws1], axis=1)                        # (256,128)
    bh1 = jnp.concatenate([be1, bs1], axis=1)                        # (1,128)
    wh2 = jnp.zeros((2 * HID, OUT_PAD), F32)
    wh2 = wh2.at[:HID, :N_EMO].set(we2).at[HID:, N_EMO:N_EMO + N_SENT].set(ws2)
    bh2 = jnp.zeros((1, OUT_PAD), F32)
    bh2 = bh2.at[:, :N_EMO].set(be2).at[:, N_EMO:N_EMO + N_SENT].set(bs2)

    # ---- pack into 3 blobs (2 bf16 weight blobs + 1 f32 bias blob) ----
    def pad_lanes(x, width):
        return jnp.pad(x, ((0, 0), (0, width - x.shape[1])))

    w_a = jnp.concatenate([wtf, wf_v, wf_a], axis=0).astype(BF16)    # (1024,256)
    w_b = jnp.concatenate(
        [wv]
        + [pad_lanes(w1f[k], PROJ) for k in range(K)]
        + [w2f[k] for k in range(K)]
        + [wp, wh1, wh2], axis=0).astype(BF16)                       # (1408,128)
    assert w_a.shape[0] == WA_ROWS and w_b.shape[0] == WB_ROWS

    biases = jnp.zeros((7, FUSED), F32)
    biases = biases.at[BI_B1, :64].set(b1f[0])
    biases = biases.at[BI_B2, :128].set(b2f[0])
    biases = biases.at[BI_BP, :128].set(bp[0])
    biases = biases.at[BI_BV, :128].set(bv[0])
    biases = biases.at[BI_BFU, :256].set(bfu[0])
    biases = biases.at[BI_BH1, :128].set(bh1[0])
    biases = biases.at[BI_BH2, :128].set(bh2[0])
    return w_a, w_b, biases


@jax.jit
def multimodal_forward(text_pooler, video_backbone_feat, audio_features, params):
    # TODO(synk): frozen BertModel backbone not re-implemented; `text_pooler`
    #             stands in for outputs.pooler_output (B, 768).
    # TODO(synk): frozen r3d_18 backbone not re-implemented;
    #             `video_backbone_feat` stands in for its penultimate (B, 512) features.
    w_a, w_b, biases = params
    batch = text_pooler.shape[0]

    # ---- layout-only input prep (wrapper/XLA, no compute hoisted) ----
    # AudioEncoder glue: x.squeeze(1), channels-last, flatten batch into sublanes
    # (per-batch stride 16), zero-pad 8 tail rows so per-tap windows are in-bounds.
    audio = jnp.transpose(jnp.squeeze(audio_features, axis=1), (0, 2, 1))  # (B,16,64)
    audio = audio.reshape(batch * AUDIO_T, AUDIO_C)
    audio = jnp.pad(audio, ((0, 8), (0, 0))).astype(F32)                   # (B*16+8,64)

    # Constant block-averaging matrix for AdaptiveAvgPool1d(1) (0.2 at cols
    # b*8+t, t<5), appended to the f32 blob.  Assumes batch*8 <= 256.
    rel = (jnp.arange(FUSED, dtype=jnp.int32)[None, :]
           - T_HALF * jnp.arange(batch, dtype=jnp.int32)[:, None])
    avg_rows = jnp.where((rel >= 0) & (rel < L2), 1.0 / L2, 0.0).astype(F32)
    f32_blob = jnp.concatenate([biases, avg_rows], axis=0)                 # (7+B,256)

    args = (text_pooler.astype(BF16), video_backbone_feat.astype(BF16), audio,
            w_a, w_b, f32_blob)

    vmem = pl.BlockSpec(memory_space=pltpu.MemorySpace.VMEM)
    logits = pl.pallas_call(
        multimodal_kernel,
        out_shape=jax.ShapeDtypeStruct((batch, OUT_PAD), jnp.float32),
        in_specs=[vmem] * len(args),
        out_specs=vmem,
        scratch_shapes=[pltpu.VMEM((batch * AUDIO_T + 8, AUDIO_C), jnp.float32)],
    )(*args)
    # lane-dense (B,128) store in-kernel; head split is free wrapper-side slicing
    return {'emotions': logits[:, :N_EMO],
            'sentiments': logits[:, N_EMO:N_EMO + N_SENT]}


if __name__ == "__main__":
    key = jax.random.PRNGKey(0)
    k_text, k_video, k_audio, k_params = jax.random.split(key, 4)

    text_pooler = jax.random.normal(k_text, (B, TEXT_DIM), jnp.float32)      # BERT pooler_output
    video_feat = jax.random.normal(k_video, (B, VIDEO_DIM), jnp.float32)     # r3d_18 features
    audio_features = jax.random.normal(k_audio, (B, 1, AUDIO_C, AUDIO_T), jnp.float32)

    params = make_params(k_params)

    out = jax.block_until_ready(
        multimodal_forward(text_pooler, video_feat, audio_features, params))

    assert out['emotions'].shape == (B, N_EMO)
    assert out['sentiments'].shape == (B, N_SENT)
    assert jnp.all(jnp.isfinite(out['emotions'])) and jnp.all(jnp.isfinite(out['sentiments']))
    print("KERNEL_OK")
</pallas_src>

<mosaic_0001>
module attributes {stable_mosaic.version = 11 : i64} {
  func.func @multimodal_kernel(%arg0: memref<2x768xbf16, #tpu.memory_space<vmem>>, %arg1: memref<2x512xbf16, #tpu.memory_space<vmem>>, %arg2: memref<40x64xf32, #tpu.memory_space<vmem>>, %arg3: memref<1024x256xbf16, #tpu.memory_space<vmem>>, %arg4: memref<1408x128xbf16, #tpu.memory_space<vmem>>, %arg5: memref<9x256xf32, #tpu.memory_space<vmem>>, %arg6: memref<2x128xf32, #tpu.memory_space<vmem>>, %arg7: memref<40x64xf32, #tpu.memory_space<vmem>>) attributes {dimension_semantics = [], scalar_prefetch = 0 : i64, scratch_operands = 1 : i64, tpu.core_type = #tpu.core_type<tc>} {
    %c0 = arith.constant 0 : index
    %c0_0 = arith.constant 0 : index
    %0 = vector.load %arg1[%c0, %c0_0] : memref<2x512xbf16, #tpu.memory_space<vmem>>, vector<2x512xbf16>
    %c0_1 = arith.constant 0 : index
    %c0_2 = arith.constant 0 : index
    %1 = vector.load %arg4[%c0_1, %c0_2] : memref<1408x128xbf16, #tpu.memory_space<vmem>>, vector<512x128xbf16>
    %cst = arith.constant dense<0.000000e+00> : vector<2x128xf32>
    %2 = tpu.matmul %0, %1, %cst {dimension_numbers = #tpu.dot_dimension_numbers<[1], [0], [0], [1], [0, 0, 1, 1], [], []>} : vector<2x512xbf16>, vector<512x128xbf16>, vector<2x128xf32> -> vector<2x128xf32>
    %c3 = arith.constant 3 : index
    %c0_3 = arith.constant 0 : index
    %3 = vector.load %arg5[%c3, %c0_3] : memref<9x256xf32, #tpu.memory_space<vmem>>, vector<1x128xf32>
    %4 = vector.broadcast %3 : vector<1x128xf32> to vector<2x128xf32>
    %5 = arith.addf %2, %4 : vector<2x128xf32>
    %cst_4 = arith.constant 0.000000e+00 : f32
    %6 = vector.broadcast %cst_4 : f32 to vector<2x128xf32>
    %7 = arith.maximumf %5, %6 : vector<2x128xf32>
    %cst_5 = arith.constant 0.000000e+00 : f32
    %8 = vector.broadcast %cst_5 : f32 to vector<32x64xf32>
    %c512 = arith.constant 512 : index
    %c0_6 = arith.constant 0 : index
    %9 = vector.load %arg4[%c512, %c0_6] : memref<1408x128xbf16, #tpu.memory_space<vmem>>, vector<64x64xbf16>
    %c0_7 = arith.constant 0 : index
    %c0_8 = arith.constant 0 : index
    %10 = vector.load %arg2[%c0_7, %c0_8] : memref<40x64xf32, #tpu.memory_space<vmem>>, vector<32x64xf32>
    %11 = arith.truncf %10 : vector<32x64xf32> to vector<32x64xbf16>
    %cst_9 = arith.constant dense<0.000000e+00> : vector<32x64xf32>
    %12 = tpu.matmul %11, %9, %cst_9 {dimension_numbers = #tpu.dot_dimension_numbers<[1], [0], [0], [1], [0, 0, 1, 1], [], []>} : vector<32x64xbf16>, vector<64x64xbf16>, vector<32x64xf32> -> vector<32x64xf32>
    %13 = arith.addf %8, %12 : vector<32x64xf32>
    %c576 = arith.constant 576 : index
    %c0_10 = arith.constant 0 : index
    %14 = vector.load %arg4[%c576, %c0_10] : memref<1408x128xbf16, #tpu.memory_space<vmem>>, vector<64x64xbf16>
    %c1 = arith.constant 1 : index
    %c0_11 = arith.constant 0 : index
    %15 = vector.load %arg2[%c1, %c0_11] : memref<40x64xf32, #tpu.memory_space<vmem>>, vector<32x64xf32>
    %16 = arith.truncf %15 : vector<32x64xf32> to vector<32x64xbf16>
    %cst_12 = arith.constant dense<0.000000e+00> : vector<32x64xf32>
    %17 = tpu.matmul %16, %14, %cst_12 {dimension_numbers = #tpu.dot_dimension_numbers<[1], [0], [0], [1], [0, 0, 1, 1], [], []>} : vector<32x64xbf16>, vector<64x64xbf16>, vector<32x64xf32> -> vector<32x64xf32>
    %18 = arith.addf %13, %17 : vector<32x64xf32>
    %c640 = arith.constant 640 : index
    %c0_13 = arith.constant 0 : index
    %19 = vector.load %arg4[%c640, %c0_13] : memref<1408x128xbf16, #tpu.memory_space<vmem>>, vector<64x64xbf16>
    %c2 = arith.constant 2 : index
    %c0_14 = arith.constant 0 : index
    %20 = vector.load %arg2[%c2, %c0_14] : memref<40x64xf32, #tpu.memory_space<vmem>>, vector<32x64xf32>
    %21 = arith.truncf %20 : vector<32x64xf32> to vector<32x64xbf16>
    %cst_15 = arith.constant dense<0.000000e+00> : vector<32x64xf32>
    %22 = tpu.matmul %21, %19, %cst_15 {dimension_numbers = #tpu.dot_dimension_numbers<[1], [0], [0], [1], [0, 0, 1, 1], [], []>} : vector<32x64xbf16>, vector<64x64xbf16>, vector<32x64xf32> -> vector<32x64xf32>
    %23 = arith.addf %18, %22 : vector<32x64xf32>
    %c0_16 = arith.constant 0 : index
    %c0_17 = arith.constant 0 : index
    %24 = vector.load %arg5[%c0_16, %c0_17] : memref<9x256xf32, #tpu.memory_space<vmem>>, vector<1x64xf32>
    %25 = vector.broadcast %24 : vector<1x64xf32> to vector<32x64xf32>
    %26 = arith.addf %23, %25 : vector<32x64xf32>
    %cst_18 = arith.constant 0.000000e+00 : f32
    %27 = vector.broadcast %cst_18 : f32 to vector<32x64xf32>
    %28 = arith.maximumf %26, %27 : vector<32x64xf32>
    %c0_19 = arith.constant 0 : index
    %c0_20 = arith.constant 0 : index
    %29 = vector.load %arg7[%c0_19, %c0_20] : memref<40x64xf32, #tpu.memory_space<vmem>>, vector<32x64xf32>
    tpu.vector_store %arg7[%c0_19, %c0_20], %28 {strides = array<i32>} : memref<40x64xf32, #tpu.memory_space<vmem>>, vector<32x64xf32>,
    %cst_21 = arith.constant 0.000000e+00 : f32
    %30 = vector.broadcast %cst_21 : f32 to vector<8x64xf32>
    %c32 = arith.constant 32 : index
    %c0_22 = arith.constant 0 : index
    %31 = vector.load %arg7[%c32, %c0_22] : memref<40x64xf32, #tpu.memory_space<vmem>>, vector<8x64xf32>
    tpu.vector_store %arg7[%c32, %c0_22], %30 {strides = array<i32>} : memref<40x64xf32, #tpu.memory_space<vmem>>, vector<8x64xf32>,
    %cst_23 = arith.constant 0.000000e+00 : f32
    %32 = vector.broadcast %cst_23 : f32 to vector<16x128xf32>
    %c0_24 = arith.constant 0 : index
    %c0_25 = arith.constant 0 : index
    %33 = tpu.strided_load %arg7[%c0_24, %c0_25] {strides = array<i32: 2, 1>} : memref<40x64xf32, #tpu.memory_space<vmem>>, vector<16x64xf32>
    %c1_26 = arith.constant 1 : index
    %c0_27 = arith.constant 0 : index
    %34 = tpu.strided_load %arg7[%c1_26, %c0_27] {strides = array<i32: 2, 1>} : memref<40x64xf32, #tpu.memory_space<vmem>>, vector<16x64xf32>
    %35 = arith.maximumf %33, %34 : vector<16x64xf32>
    %c704 = arith.constant 704 : index
    %c0_28 = arith.constant 0 : index
    %36 = vector.load %arg4[%c704, %c0_28] : memref<1408x128xbf16, #tpu.memory_space<vmem>>, vector<64x128xbf16>
    %37 = arith.truncf %35 : vector<16x64xf32> to vector<16x64xbf16>
    %cst_29 = arith.constant dense<0.000000e+00> : vector<16x128xf32>
    %38 = tpu.matmul %37, %36, %cst_29 {dimension_numbers = #tpu.dot_dimension_numbers<[1], [0], [0], [1], [0, 0, 1, 1], [], []>} : vector<16x64xbf16>, vector<64x128xbf16>, vector<16x128xf32> -> vector<16x128xf32>
    %39 = arith.addf %32, %38 : vector<16x128xf32>
    %c2_30 = arith.constant 2 : index
    %c0_31 = arith.constant 0 : index
    %40 = tpu.strided_load %arg7[%c2_30, %c0_31] {strides = array<i32: 2, 1>} : memref<40x64xf32, #tpu.memory_space<vmem>>, vector<16x64xf32>
    %c3_32 = arith.constant 3 : index
    %c0_33 = arith.constant 0 : index
    %41 = tpu.strided_load %arg7[%c3_32, %c0_33] {strides = array<i32: 2, 1>} : memref<40x64xf32, #tpu.memory_space<vmem>>, vector<16x64xf32>
    %42 = arith.maximumf %40, %41 : vector<16x64xf32>
    %c768 = arith.constant 768 : index
    %c0_34 = arith.constant 0 : index
    %43 = vector.load %arg4[%c768, %c0_34] : memref<1408x128xbf16, #tpu.memory_space<vmem>>, vector<64x128xbf16>
    %44 = arith.truncf %42 : vector<16x64xf32> to vector<16x64xbf16>
    %cst_35 = arith.constant dense<0.000000e+00> : vector<16x128xf32>
    %45 = tpu.matmul %44, %43, %cst_35 {dimension_numbers = #tpu.dot_dimension_numbers<[1], [0], [0], [1], [0, 0, 1, 1], [], []>} : vector<16x64xbf16>, vector<64x128xbf16>, vector<16x128xf32> -> vector<16x128xf32>
    %46 = arith.addf %39, %45 : vector<16x128xf32>
    %c4 = arith.constant 4 : index
    %c0_36 = arith.constant 0 : index
    %47 = tpu.strided_load %arg7[%c4, %c0_36] {strides = array<i32: 2, 1>} : memref<40x64xf32, #tpu.memory_space<vmem>>, vector<16x64xf32>
    %c5 = arith.constant 5 : index
    %c0_37 = arith.constant 0 : index
    %48 = tpu.strided_load %arg7[%c5, %c0_37] {strides = array<i32: 2, 1>} : memref<40x64xf32, #tpu.memory_space<vmem>>, vector<16x64xf32>
    %49 = arith.maximumf %47, %48 : vector<16x64xf32>
    %c832 = arith.constant 832 : index
    %c0_38 = arith.constant 0 : index
    %50 = vector.load %arg4[%c832, %c0_38] : memref<1408x128xbf16, #tpu.memory_space<vmem>>, vector<64x128xbf16>
    %51 = arith.truncf %49 : vector<16x64xf32> to vector<16x64xbf16>
    %cst_39 = arith.constant dense<0.000000e+00> : vector<16x128xf32>
    %52 = tpu.matmul %51, %50, %cst_39 {dimension_numbers = #tpu.dot_dimension_numbers<[1], [0], [0], [1], [0, 0, 1, 1], [], []>} : vector<16x64xbf16>, vector<64x128xbf16>, vector<16x128xf32> -> vector<16x128xf32>
    %53 = arith.addf %46, %52 : vector<16x128xf32>
    %c1_40 = arith.constant 1 : index
    %c0_41 = arith.constant 0 : index
    %54 = vector.load %arg5[%c1_40, %c0_41] : memref<9x256xf32, #tpu.memory_space<vmem>>, vector<1x128xf32>
    %55 = vector.broadcast %54 : vector<1x128xf32> to vector<16x128xf32>
    %56 = arith.addf %53, %55 : vector<16x128xf32>
    %cst_42 = arith.constant 0.000000e+00 : f32
    %57 = vector.broadcast %cst_42 : f32 to vector<16x128xf32>
    %58 = arith.maximumf %56, %57 : vector<16x128xf32>
    %c7 = arith.constant 7 : index
    %c0_43 = arith.constant 0 : index
    %59 = vector.load %arg5[%c7, %c0_43] : memref<9x256xf32, #tpu.memory_space<vmem>>, vector<2x16xf32>
    %60 = arith.truncf %58 : vector<16x128xf32> to vector<16x128xbf16>
    %61 = arith.truncf %59 : vector<2x16xf32> to vector<2x16xbf16>
    %cst_44 = arith.constant dense<0.000000e+00> : vector<2x128xf32>
    %62 = tpu.matmul %61, %60, %cst_44 {dimension_numbers = #tpu.dot_dimension_numbers<[1], [0], [0], [1], [0, 0, 1, 1], [], []>} : vector<2x16xbf16>, vector<16x128xbf16>, vector<2x128xf32> -> vector<2x128xf32>
    %c896 = arith.constant 896 : index
    %c0_45 = arith.constant 0 : index
    %63 = vector.load %arg4[%c896, %c0_45] : memref<1408x128xbf16, #tpu.memory_space<vmem>>, vector<128x128xbf16>
    %64 = arith.truncf %62 : vector<2x128xf32> to vector<2x128xbf16>
    %cst_46 = arith.constant dense<0.000000e+00> : vector<2x128xf32>
    %65 = tpu.matmul %64, %63, %cst_46 {dimension_numbers = #tpu.dot_dimension_numbers<[1], [0], [0], [1], [0, 0, 1, 1], [], []>} : vector<2x128xbf16>, vector<128x128xbf16>, vector<2x128xf32> -> vector<2x128xf32>
    %c2_47 = arith.constant 2 : index
    %c0_48 = arith.constant 0 : index
    %66 = vector.load %arg5[%c2_47, %c0_48] : memref<9x256xf32, #tpu.memory_space<vmem>>, vector<1x128xf32>
    %67 = vector.broadcast %66 : vector<1x128xf32> to vector<2x128xf32>
    %68 = arith.addf %65, %67 : vector<2x128xf32>
    %cst_49 = arith.constant 0.000000e+00 : f32
    %69 = vector.broadcast %cst_49 : f32 to vector<2x128xf32>
    %70 = arith.maximumf %68, %69 : vector<2x128xf32>
    %c0_50 = arith.constant 0 : index
    %c0_51 = arith.constant 0 : index
    %71 = vector.load %arg0[%c0_50, %c0_51] : memref<2x768xbf16, #tpu.memory_space<vmem>>, vector<2x768xbf16>
    %c0_52 = arith.constant 0 : index
    %c0_53 = arith.constant 0 : index
    %72 = vector.load %arg3[%c0_52, %c0_53] : memref<1024x256xbf16, #tpu.memory_space<vmem>>, vector<768x256xbf16>
    %cst_54 = arith.constant dense<0.000000e+00> : vector<2x256xf32>
    %73 = tpu.matmul %71, %72, %cst_54 {dimension_numbers = #tpu.dot_dimension_numbers<[1], [0], [0], [1], [0, 0, 1, 1], [], []>} : vector<2x768xbf16>, vector<768x256xbf16>, vector<2x256xf32> -> vector<2x256xf32>
    %c768_55 = arith.constant 768 : index
    %c0_56 = arith.constant 0 : index
    %74 = vector.load %arg3[%c768_55, %c0_56] : memref<1024x256xbf16, #tpu.memory_space<vmem>>, vector<128x256xbf16>
    %75 = arith.truncf %7 : vector<2x128xf32> to vector<2x128xbf16>
    %cst_57 = arith.constant dense<0.000000e+00> : vector<2x256xf32>
    %76 = tpu.matmul %75, %74, %cst_57 {dimension_numbers = #tpu.dot_dimension_numbers<[1], [0], [0], [1], [0, 0, 1, 1], [], []>} : vector<2x128xbf16>, vector<128x256xbf16>, vector<2x256xf32> -> vector<2x256xf32>
    %77 = arith.addf %73, %76 : vector<2x256xf32>
    %c896_58 = arith.constant 896 : index
    %c0_59 = arith.constant 0 : index
    %78 = vector.load %arg3[%c896_58, %c0_59] : memref<1024x256xbf16, #tpu.memory_space<vmem>>, vector<128x256xbf16>
    %79 = arith.truncf %70 : vector<2x128xf32> to vector<2x128xbf16>
    %cst_60 = arith.constant dense<0.000000e+00> : vector<2x256xf32>
    %80 = tpu.matmul %79, %78, %cst_60 {dimension_numbers = #tpu.dot_dimension_numbers<[1], [0], [0], [1], [0, 0, 1, 1], [], []>} : vector<2x128xbf16>, vector<128x256xbf16>, vector<2x256xf32> -> vector<2x256xf32>
    %81 = arith.addf %77, %80 : vector<2x256xf32>
    %c4_61 = arith.constant 4 : index
    %c0_62 = arith.constant 0 : index
    %82 = vector.load %arg5[%c4_61, %c0_62] : memref<9x256xf32, #tpu.memory_space<vmem>>, vector<1x256xf32>
    %83 = vector.broadcast %82 : vector<1x256xf32> to vector<2x256xf32>
    %84 = arith.addf %81, %83 : vector<2x256xf32>
    %cst_63 = arith.constant 0.000000e+00 : f32
    %85 = vector.broadcast %cst_63 : f32 to vector<2x256xf32>
    %86 = arith.maximumf %84, %85 : vector<2x256xf32>
    %c1024 = arith.constant 1024 : index
    %c0_64 = arith.constant 0 : index
    %87 = vector.load %arg4[%c1024, %c0_64] : memref<1408x128xbf16, #tpu.memory_space<vmem>>, vector<256x128xbf16>
    %88 = arith.truncf %86 : vector<2x256xf32> to vector<2x256xbf16>
    %cst_65 = arith.constant dense<0.000000e+00> : vector<2x128xf32>
    %89 = tpu.matmul %88, %87, %cst_65 {dimension_numbers = #tpu.dot_dimension_numbers<[1], [0], [0], [1], [0, 0, 1, 1], [], []>} : vector<2x256xbf16>, vector<256x128xbf16>, vector<2x128xf32> -> vector<2x128xf32>
    %c5_66 = arith.constant 5 : index
    %c0_67 = arith.constant 0 : index
    %90 = vector.load %arg5[%c5_66, %c0_67] : memref<9x256xf32, #tpu.memory_space<vmem>>, vector<1x128xf32>
    %91 = vector.broadcast %90 : vector<1x128xf32> to vector<2x128xf32>
    %92 = arith.addf %89, %91 : vector<2x128xf32>
    %cst_68 = arith.constant 0.000000e+00 : f32
    %93 = vector.broadcast %cst_68 : f32 to vector<2x128xf32>
    %94 = arith.maximumf %92, %93 : vector<2x128xf32>
    %c1280 = arith.constant 1280 : index
    %c0_69 = arith.constant 0 : index
    %95 = vector.load %arg4[%c1280, %c0_69] : memref<1408x128xbf16, #tpu.memory_space<vmem>>, vector<128x128xbf16>
    %96 = arith.truncf %94 : vector<2x128xf32> to vector<2x128xbf16>
    %cst_70 = arith.constant dense<0.000000e+00> : vector<2x128xf32>
    %97 = tpu.matmul %96, %95, %cst_70 {dimension_numbers = #tpu.dot_dimension_numbers<[1], [0], [0], [1], [0, 0, 1, 1], [], []>} : vector<2x128xbf16>, vector<128x128xbf16>, vector<2x128xf32> -> vector<2x128xf32>
    %c6 = arith.constant 6 : index
    %c0_71 = arith.constant 0 : index
    %98 = vector.load %arg5[%c6, %c0_71] : memref<9x256xf32, #tpu.memory_space<vmem>>, vector<1x128xf32>
    %99 = vector.broadcast %98 : vector<1x128xf32> to vector<2x128xf32>
    %100 = arith.addf %97, %99 : vector<2x128xf32>
    %c0_72 = arith.constant 0 : index
    %c0_73 = arith.constant 0 : index
    %101 = vector.load %arg6[%c0_72, %c0_73] : memref<2x128xf32, #tpu.memory_space<vmem>>, vector<2x128xf32>
    tpu.vector_store %arg6[%c0_72, %c0_73], %100 {strides = array<i32>} : memref<2x128xf32, #tpu.memory_space<vmem>>, vector<2x128xf32>,
    return
  }
}

</mosaic_0001>

<bundles_post_ra>
// kernel: multimodal_forward.1
= control target key start
LH: loop header
LB: loop body
LE: loop exit
PB: predicated region body
PF: predicated region fallthrough
CT: control target
= control target key end

     0   :  { %11 = vsyncpa [#allocation4], 0  ;;  %s3508_s0 = inlined_call_operand.vmem [shape: bf16[2,768], index: 0, kind: input, shape index: {}]   ;;  %s3509_s1 = inlined_call_operand.vmem [shape: bf16[2,512], index: 1, kind: input, shape index: {}]   ;;  %s3510_s2 = inlined_call_operand.vmem [shape: f32[40,64], index: 2, kind: input, shape index: {}]   ;;  %s3511_s3 = inlined_call_operand.hbm [shape: bf16[1024,256], index: 3, kind: input, shape index: {}]   ;;  %s3512_s4 = inlined_call_operand.hbm [shape: bf16[1408,128], index: 4, kind: input, shape index: {}]   ;;  %s3513_s5 = inlined_call_operand.vmem [shape: f32[9,256], index: 5, kind: input, shape index: {}]   ;;  %s3514_s6 = inlined_call_operand.vmem [shape: f32[2,128], index: 6, kind: output, shape index: {}]  }
   0x1   :  { %12 = vsyncpa [#allocation6], 0  ;;  %s3282_s21 = smov [#allocation3]  }
   0x2   :  { %s24_s22 = sshll.u32 %s3282_s21, 4  ;;  %s25_s22 = int_to_ptr.vmem [resolvable:$true] %s24_s22 }
   0x3   :  { %s3246_s23 = scalar_lea.vmem %s25_s22, 16384  ;;  %p3251_p1 = scmp.lt.s32.totalorder %s25_s22, %s25_s22 }
   0x4   :  { %p3247_p0 = scmp.ne.s32.totalorder %s25_s22, %s3246_s23  ;;  %p3252_p2 = scmp.lt.s32.totalorder %s3246_s23, %s3246_s23 }
   0x6   :  { %p3253_p3 = por %p3252_p2, %p3251_p1 }
   0x8   :  { %p3254_p4 = pnand %p3253_p3, %p3247_p0 }
   0xa   :  { %3257 = shalt.err (!%p3254_p4)
}
   0xb   :  { %s3283_s24 = smov 128   ;;  %s3284_s25 = smov 8  }
   0xc   :  { %30 = dma.hbm_to_vmem [thread:$0]  %s3511_s3, 16384, %s25_s22, [#allocation4], %s3283_s24, %s3283_s24, %s3284_s25  }
   0xd   :  { %s3285_s28 = smov [#allocation5]  }
   0xe   :  { %s36_s29 = sshll.u32 %s3285_s28, 4  ;;  %s37_s29 = int_to_ptr.vmem [resolvable:$true] %s36_s29 }
   0xf   :  { %s3266_s30 = scalar_lea.vmem %s37_s29, 11264  ;;  %p3271_p6 = scmp.lt.s32.totalorder %s37_s29, %s37_s29 }
  0x10   :  { %p3267_p5 = scmp.ne.s32.totalorder %s37_s29, %s3266_s30  ;;  %p3272_p7 = scmp.lt.s32.totalorder %s3266_s30, %s3266_s30 }
  0x12   :  { %p3273_p8 = por %p3272_p7, %p3271_p6 }
  0x14   :  { %p3274_p9 = pnand %p3273_p8, %p3267_p5 }
  0x16   :  { %3277 = shalt.err (!%p3274_p9)
}
  0x17   :  { %s3286_s7 = smov 64   ;;  %s3287_s8 = smov 4  }
  0x18   :  { %42 = dma.hbm_to_vmem [thread:$0]  %s3512_s4, 11264, %s37_s29, [#allocation6], %s3286_s7, %s3286_s7, %s3287_s8  }
  0x19   :  { %3278 = dma.done.wait [#allocation4], 16384  }
  0x1a   :  { %3279 = vsyncadd [#allocation4], 4294950912 }
  0x1b   :  { %3280 = dma.done.wait [#allocation6], 11264  }
  0x1c   :  { %3281 = vsyncadd [#allocation6], 4294956032  ;;  %v2957_v0 = vld [vmem:[#allocation5 + $0x78] sm:$0xff]   ;;  %v2961_v4 = vld [vmem:[#allocation5 + $0x70] sm:$0xff]   ;;  %v3288_v21 = vmov 1966171168   ;;  %v130_v23 = vlaneseq }
  0x1d   :  { %v2958_v1 = vld [vmem:[#allocation5 + $0x38] sm:$0xff]   ;;  %2710 = vmatprep.subr.bf16.mxu0 %v2957_v0  ;;  %v2962_v5 = vld [vmem:[#allocation5 + $0x30] sm:$0xff]   ;;  %v2965_v8 = vld [vmem:[#allocation5 + $0x68] sm:$0xff]   ;;  %v128_v22 = vunpack.c.l.s4 %v3288_v21  ;;  %vm472_vm0 = vcmask 523264   ;;  %vm3290_vm1 = vmmov 0   ;;  %vm997_vm2 = vcmask 130048  }
  0x1e   :  { %v2959_v2 = vld [vmem:[#allocation5 + $0xf8] sm:$0xff]   ;;  %2711 = vmatpush3.bf16.msra.mxu0 %v2958_v1  ;;  %v2963_v6 = vld [vmem:[#allocation5 + $0xf0] sm:$0xff]   ;;  %v2966_v9 = vld [vmem:[#allocation5 + $0x28] sm:$0xff]   ;;  %v3333_v29 = vshrl.u32 %v130_v23, 7 }
  0x1f   :  { %v2960_v3 = vld [vmem:[#allocation5 + $0xb8] sm:$0xff]   ;;  %2732 = vmatprep.subr.bf16.mxu1 %v2959_v2  ;;  %2712 = vmatprep.subr.bf16.mxu0 %v2961_v4  ;;  %v2964_v7 = vld [vmem:[#allocation5 + $0xb0] sm:$0xff]   ;;  %v2967_v10 = vld [vmem:[#allocation5 + $0xe8] sm:$0xff]   ;;  %v129_v28 = vunpack.c.0.s8 %v128_v22 }
  0x20   :  { %2733 = vmatpush3.bf16.msra.mxu1 %v2960_v3  ;;  %v2968_v11 = vld [vmem:[#allocation5 + $0xa8] sm:$0xff]   ;;  %v2969_v12 = vld [vmem:[#allocation5 + $0x60] sm:$0xff]   ;;  %v2973_v16 = vld [vmem:[#allocation5 + $0x58] sm:$0xff]  }
  0x21   :  { %2734 = vmatprep.subr.bf16.mxu1 %v2963_v6  ;;  %v2970_v13 = vld [vmem:[#allocation5 + $0x20] sm:$0xff]   ;;  %v2974_v17 = vld [vmem:[#allocation5 + $0x18] sm:$0xff]   ;;  %v2977_v20 = vld [vmem:[#allocation5 + $0x50] sm:$0xff]   ;;  %v3336_v34 = vsub.s32 %v129_v28, %v3333_v29 }
  0x22   :  { %2713 = vmatpush3.bf16.msra.mxu0 %v2962_v5  ;;  %v2971_v14 = vld [vmem:[#allocation5 + $0xe0] sm:$0xff]   ;;  %v2975_v18 = vld [vmem:[#allocation5 + $0xd8] sm:$0xff]   ;;  %v2978_v24 = vld [vmem:[#allocation5 + $0x10] sm:$0xff]  }
  0x23   :  { %2714 = vmatprep.subr.bf16.mxu0 %v2965_v8  ;;  %v2972_v15 = vld [vmem:[#allocation5 + $0xa0] sm:$0xff]   ;;  %v2976_v19 = vld [vmem:[#allocation5 + $0x98] sm:$0xff]   ;;  %v2979_v25 = vld [vmem:[#allocation5 + $0xd0] sm:$0xff]  }
  0x24   :  { %2735 = vmatpush3.bf16.msra.mxu1 %v2964_v7  ;;  %v2980_v26 = vld [vmem:[#allocation5 + $0x90] sm:$0xff]   ;;  %v2981_v27 = vld [vmem:[#allocation5 + $0x48] sm:$0xff]   ;;  %v2985_v33 = vld [vmem:[#allocation5 + $0x40] sm:$0xff]  }
  0x25   :  { %2736 = vmatprep.subr.bf16.mxu1 %v2967_v10  ;;  %v2982_v30 = vld [vmem:[#allocation5 + $0x8] sm:$0xff]   ;;  %v2986_v35 = vld [vmem:[#allocation5] sm:$0xff]   ;;  %v2482_v37 = vld.sshfl [vmem:[%s3509_s1] sm:$0x33 pattern:$0x75316420] }
  0x26   :  { %2715 = vmatpush3.bf16.msra.mxu0 %v2966_v9  ;;  %v2983_v31 = vld [vmem:[#allocation5 + $0xc8] sm:$0xff]   ;;  %v2987_v36 = vld [vmem:[#allocation5 + $0xc0] sm:$0xff]   ;;  %v126_v38 = vcombine.high %v2482_v37, %v2482_v37  ;;  %v133_v40 = vrot.slane %v2482_v37, %v3336_v34  ;;  %v2989_v41 = vld [vmem:[#allocation5 + $0x138] sm:$0xff]  }
  0x27   :  { %2716 = vmatprep.subr.bf16.mxu0 %v2969_v12  ;;  %v2984_v32 = vld [vmem:[#allocation5 + $0x88] sm:$0xff]   ;;  %v2988_v39 = vld [vmem:[#allocation5 + $0x80] sm:$0xff]   ;;  %v2990_v44 = vld [vmem:[#allocation5 + $0x130] sm:$0xff]  }
  0x28   :  { %2737 = vmatpush3.bf16.msra.mxu1 %v2968_v11  ;;  %v140_v42 = vrot.slane %v126_v38, %v3336_v34  ;;  %v141_v43 = vcombine.high %v133_v40, %v133_v40  ;;  %v442_v46 = vld [vmem:[%s3510_s2 + $0x1] sm:$0xff]  ;;  %v443_v47 = vld [vmem:[%s3510_s2 + $0x9] sm:$0xff]  ;;  %v444_v51 = vld [vmem:[%s3510_s2 + $0x11] sm:$0xff]  ;;  %v3289_v11 = vmov 0.0  }
  0x29   :  { %2738 = vmatprep.subr.bf16.mxu1 %v2971_v14  ;;  %v446_v48 = vpack.c.bf16 %v443_v47, %v442_v46  ;;  %v2991_v49 = vld [vmem:[#allocation5 + $0x128] sm:$0xff]   ;;  %v2992_v50 = vld [vmem:[#allocation5 + $0x120] sm:$0xff]   ;;  %v445_v52 = vld [vmem:[%s3510_s2 + $0x19] sm:$0xff]  ;;  %717 = vst.msk [vmem:[#allocation2 + $0x20] sm:$0xff] %vm472_vm0, %v3289_v11 }
  0x2a   :  { %2717 = vmatpush3.bf16.msra.mxu0 %v2970_v13  ;;  %371 = vmatprep.mubr.bf16.mxu0 %v140_v42  ;;  %v142_v45 = vcombine.high %v140_v42, %v140_v42  ;;  %v2993_v53 = vld [vmem:[#allocation5 + $0x118] sm:$0xff]   ;;  %v429_v55 = vld [vmem:[%s3510_s2 + $0x8] sm:$0xff]  ;;  %v447_v56 = vpack.c.bf16 %v445_v52, %v444_v51  ;;  %v2994_v57 = vld [vmem:[#allocation5 + $0x110] sm:$0xff]  }
  0x2b   :  { %2718 = vmatprep.subr.bf16.mxu0 %v2973_v16  ;;  %v428_v54 = vld [vmem:[%s3510_s2] sm:$0xff]  ;;  %v2995_v59 = vld [vmem:[#allocation5 + $0x108] sm:$0xff]   ;;  %v2996_v60 = vld [vmem:[#allocation5 + $0x100] sm:$0xff]  }
  0x2c   :  { %2739 = vmatpush3.bf16.msra.mxu1 %v2972_v15  ;;  %411 = vmatprep.mubr.bf16.mxu1 %v142_v45  ;;  %v432_v58 = vpack.c.bf16 %v429_v55, %v428_v54  ;;  %v430_v61 = vld [vmem:[%s3510_s2 + $0x10] sm:$0xff]  ;;  %v431_v62 = vld [vmem:[%s3510_s2 + $0x18] sm:$0xff]  ;;  %v2997_v63 = vld [vmem:[#allocation5 + $0x158] sm:$0xff]  }
  0x2d   :  { %2740 = vmatprep.subr.bf16.mxu1 %v2975_v18  ;;  %v615_v0 = vld [vmem:[%s3510_s2 + $0x2] sm:$0xff]  ;;  %v616_v1 = vld [vmem:[%s3510_s2 + $0xa] sm:$0xff]  ;;  %v433_v2 = vpack.c.bf16 %v431_v62, %v430_v61  ;;  %v2998_v3 = vld [vmem:[#allocation5 + $0x150] sm:$0xff]  }
  0x2e   :  { %2719 = vmatpush3.bf16.msra.mxu0 %v2974_v17  ;;  %v619_v4 = vpack.c.bf16 %v616_v1, %v615_v0  ;;  %v2999_v5 = vld [vmem:[#allocation5 + $0x148] sm:$0xff]   ;;  %v3000_v6 = vld [vmem:[#allocation5 + $0x140] sm:$0xff]   ;;  %v618_v8 = vld [vmem:[%s3510_s2 + $0x1a] sm:$0xff] }
  0x2f   :  { %2720 = vmatprep.subr.bf16.mxu0 %v2977_v20  ;;  %v617_v7 = vld [vmem:[%s3510_s2 + $0x12] sm:$0xff]  ;;  %v3001_v10 = vld [vmem:[#allocation5 + $0x198] sm:$0xff]   ;;  %v3007_v17 = vld [vmem:[#allocation5 + $0x180] sm:$0xff]  }
  0x30   :  { %2741 = vmatpush3.bf16.msra.mxu1 %v2976_v19  ;;  %v620_v9 = vpack.c.bf16 %v618_v8, %v617_v7  ;;  %v3002_v12 = vld [vmem:[#allocation5 + $0x178] sm:$0xff]   ;;  %v3003_v13 = vld [vmem:[#allocation5 + $0x190] sm:$0xff]   ;;  %v3005_v15 = vld [vmem:[#allocation5 + $0x188] sm:$0xff]  }
  0x31   :  { %2742 = vmatprep.subr.bf16.mxu1 %v2979_v25  ;;  %v3004_v14 = vld [vmem:[#allocation5 + $0x170] sm:$0xff]   ;;  %v3006_v16 = vld [vmem:[#allocation5 + $0x168] sm:$0xff]   ;;  %v3008_v18 = vld [vmem:[#allocation5 + $0x160] sm:$0xff]  }
  0x32   :  { %2721 = vmatpush3.bf16.msra.mxu0 %v2978_v24  ;;  %v117_v20 = vld [vmem:[%s3513_s5 + $0x3] ss:$0 sm:$0xff] }
  0x33   :  { %2722 = vmatprep.subr.bf16.mxu0 %v2981_v27 }
  0x34   :  { %2743 = vmatpush3.bf16.msra.mxu1 %v2980_v26 }
  0x35   :  { %2744 = vmatprep.subr.bf16.mxu1 %v2983_v31 }
  0x36   :  { %2723 = vmatpush3.bf16.msra.mxu0 %v2982_v30 }
  0x37   :  { %2724 = vmatprep.subr.bf16.mxu0 %v2985_v33 }
  0x38   :  { %2745 = vmatpush3.bf16.msra.mxu1 %v2984_v32 }
  0x39   :  { %2746 = vmatprep.subr.bf16.mxu1 %v2987_v36 }
  0x3a   :  { %2725 = vmatpush3.bf16.msra.mxu0 %v2986_v35 }
  0x3b   :  { %2829 = vmatprep.subr.bf16.mxu0 %v2989_v41 }
  0x3c   :  { %2747 = vmatpush3.bf16.msra.mxu1 %v2988_v39 }
  0x3d   :  { %372 = vmatmul.mubr.bf16.vlgmr.msra.gmra.mxu0 %v133_v40  ;;  %2865 = vmatprep.subr.bf16.mxu1 %v3289_v11 }
  0x3e   :  { %2830 = vmatpush3.bf16.msra.mxu0 %v2989_v41  ;;  %2837 = vmatprep.mubr.msk.bf16.mxu0 %vm472_vm0, %v446_v48 }
  0x3f   :  { %412 = vmatmul.mubr.bf16.vlgmr.msra.gmra.mxu1 %v141_v43  ;;  %2831 = vmatprep.subr.bf16.mxu0 %v2990_v44 }
  0x40   :  { %2866 = vmatpush3.bf16.msra.mxu1 %v3001_v10  ;;  %2873 = vmatprep.mubr.msk.bf16.mxu1 %vm3290_vm1, %v3289_v11 }
  0x41   :  { %2867 = vmatprep.subr.bf16.mxu1 %v3289_v11 }
  0x42   :  { %2832 = vmatpush3.bf16.msra.mxu0 %v2990_v44  ;;  %v704_v44 = vld [vmem:[%s3513_s5] ss:$0 sm:$0xff] }
  0x43   :  { %2833 = vmatprep.subr.bf16.mxu0 %v2991_v49 }
  0x44   :  { %2868 = vmatpush3.bf16.msra.mxu1 %v3003_v13 }
  0x45   :  { %2869 = vmatprep.subr.bf16.mxu1 %v3289_v11 }
  0x46   :  { %2834 = vmatpush3.bf16.msra.mxu0 %v2991_v49 }
  0x47   :  { %2835 = vmatprep.subr.bf16.mxu0 %v2992_v50 }
  0x48   :  { %2870 = vmatpush3.bf16.msra.mxu1 %v3005_v15  ;;  %v3010_v15 = vld [vmem:[#allocation5 + $0x1b0] sm:$0xff]  }
  0x49   :  { %2871 = vmatprep.subr.bf16.mxu1 %v3289_v11 }
  0x4a   :  { %2836 = vmatpush3.bf16.msra.mxu0 %v2992_v50 }
  0x4b   :  { %2841 = vmatprep.subr.bf16.mxu0 %v2993_v53 }
  0x4c   :  { %2872 = vmatpush3.bf16.msra.mxu1 %v3007_v17 }
  0x4d   :  { %2838 = vmatmul.mubr.msk.bf16.vlgmr.msra.gmra.mxu0 %vm472_vm0, %v447_v56  ;;  %2889 = vmatprep.subr.bf16.mxu1 %v3289_v11 }
  0x4e   :  { %2842 = vmatpush3.bf16.msra.mxu0 %v2993_v53  ;;  %2849 = vmatprep.mubr.msk.bf16.mxu0 %vm472_vm0, %v432_v58 }
  0x4f   :  { %2843 = vmatprep.subr.bf16.mxu0 %v2994_v57 }
  0x52   :  { %2844 = vmatpush3.bf16.msra.mxu0 %v2994_v57 }
  0x53   :  { %2845 = vmatprep.subr.bf16.mxu0 %v2995_v59 }
  0x56   :  { %2846 = vmatpush3.bf16.msra.mxu0 %v2995_v59 }
  0x57   :  { %2847 = vmatprep.subr.bf16.mxu0 %v2996_v60 }
  0x5a   :  { %2848 = vmatpush3.bf16.msra.mxu0 %v2996_v60 }
  0x5b   :  { %2853 = vmatprep.subr.bf16.mxu0 %v2997_v63 }
  0x5d   :  { %2850 = vmatmul.mubr.msk.bf16.vlgmr.msra.gmra.mxu0 %vm472_vm0, %v433_v2 }
  0x5e   :  { %2854 = vmatpush3.bf16.msra.mxu0 %v2997_v63  ;;  %2861 = vmatprep.mubr.msk.bf16.mxu0 %vm472_vm0, %v619_v4 }
  0x5f   :  { %2855 = vmatprep.subr.bf16.mxu0 %v2998_v3 }
  0x62   :  { %2856 = vmatpush3.bf16.msra.mxu0 %v2998_v3 }
  0x63   :  { %2857 = vmatprep.subr.bf16.mxu0 %v2999_v5 }
  0x66   :  { %2858 = vmatpush3.bf16.msra.mxu0 %v2999_v5 }
  0x67   :  { %2859 = vmatprep.subr.bf16.mxu0 %v3000_v6 }
  0x6a   :  { %2860 = vmatpush3.bf16.msra.mxu0 %v3000_v6 }
  0x6b   :  { %2877 = vmatprep.subr.bf16.mxu0 %v3289_v11 }
  0x6d   :  { %2862 = vmatmul.mubr.msk.bf16.vlgmr.msra.gmra.mxu0 %vm472_vm0, %v620_v9 }
  0x6e   :  { %2878 = vmatpush3.bf16.msra.mxu0 %v3002_v12  ;;  %2885 = vmatprep.mubr.msk.bf16.mxu0 %vm3290_vm1, %v3289_v11  ;;  %v3009_v12 = vld [vmem:[#allocation5 + $0x1b8] sm:$0xff]  }
  0x6f   :  { %2879 = vmatprep.subr.bf16.mxu0 %v3289_v11 }
  0x72   :  { %2880 = vmatpush3.bf16.msra.mxu0 %v3004_v14 }
  0x73   :  { %2881 = vmatprep.subr.bf16.mxu0 %v3289_v11 }
  0x76   :  { %2882 = vmatpush3.bf16.msra.mxu0 %v3006_v16  ;;  %v3011_v16 = vld [vmem:[#allocation5 + $0x1a8] sm:$0xff]  }
  0x77   :  { %2883 = vmatprep.subr.bf16.mxu0 %v3289_v11 }
  0x7a   :  { %2884 = vmatpush3.bf16.msra.mxu0 %v3008_v18 }
  0x7b   :  { %2901 = vmatprep.subr.bf16.mxu0 %v3289_v11 }
  0xfd   :  { %v2726_v19 = vpop.f32.mrf.mxu0 }
  0xff   :  { %v2727_v21 = vpop.f32.mrf.mxu0  ;;  %v2748_v22 = vpop.f32.mrf.mxu1 }
 0x100   :  { %v2728_v23 = vadd.f32 %v2727_v21, %v2726_v19  ;;  %v3012_v19 = vld [vmem:[#allocation5 + $0x1a0] sm:$0xff]  }
 0x101   :  { %v2729_v24 = vpop.f32.mrf.mxu0  ;;  %v2749_v25 = vpop.f32.mrf.mxu1 }
 0x102   :  { %v374_v26 = vadd.f32 %v2728_v23, %v117_v20  ;;  %v2750_v27 = vadd.f32 %v2749_v25, %v2748_v22  ;;  %v3037_v25 = vld [vmem:[#allocation5 + $0x1f8] sm:$0xff]  }
 0x103   :  { %v2730_v28 = vpop.f32.mrf.mxu0  ;;  %v2751_v30 = vpop.f32.mrf.mxu1 }
 0x104   :  { %v3404_v31 = vadd.f32 %v2750_v27, %v374_v26  ;;  %v3038_v26 = vld [vmem:[#allocation5 + $0x1f0] sm:$0xff]   ;;  %v3039_v27 = vld [vmem:[#allocation5 + $0x1e8] sm:$0xff]   ;;  %v3040_v28 = vld [vmem:[#allocation5 + $0x1e0] sm:$0xff]  }
 0x105   :  { %v2752_v32 = vpop.f32.mrf.mxu1  ;;  %v3041_v30 = vld [vmem:[#allocation5 + $0x1d8] sm:$0xff]  }
 0x106   :  { %v3042_v32 = vld [vmem:[#allocation5 + $0x1d0] sm:$0xff]  }
 0x10d   :  { %v2839_v33 = vpop.f32.mrf.mxu0 }
 0x10f   :  { %v513_v35 = vpop.f32.mrf.mxu0 }
 0x111   :  { %v2840_v36 = vpop.f32.mrf.mxu0 }
 0x113   :  { %v516_v37 = vpop.f32.mrf.mxu0 }
 0x11d   :  { %v2851_v38 = vpop.f32.mrf.mxu0 }
 0x11e   :  { %v601_v42 = vadd.f32 %v2851_v38, %v2839_v33  ;;  %v3043_v33 = vld [vmem:[#allocation5 + $0x1c8] sm:$0xff]  }
 0x11f   :  { %v592_v39 = vpop.f32.mrf.mxu0 }
 0x120   :  { %v593_v45 = vadd.f32 %v592_v39, %v513_v35  ;;  %v3044_v35 = vld [vmem:[#allocation5 + $0x1c0] sm:$0xff]  }
 0x121   :  { %v2852_v40 = vpop.f32.mrf.mxu0 }
 0x122   :  { %v604_v48 = vadd.f32 %v2852_v40, %v2840_v36 }
 0x123   :  { %v595_v41 = vpop.f32.mrf.mxu0 }
 0x124   :  { %v596_v52 = vadd.f32 %v595_v41, %v516_v37 }
 0x12d   :  { %v2863_v43 = vpop.f32.mrf.mxu0 }
 0x12e   :  { %v702_v46 = vadd.f32 %v2863_v43, %v601_v42 }
 0x12f   :  { %v685_v47 = vpop.f32.mrf.mxu0 }
 0x130   :  { %v707_v49 = vadd.f32 %v704_v44, %v702_v46  ;;  %v700_v50 = vadd.f32 %v685_v47, %v593_v45  ;;  %v986_v45 = vld [vmem:[%s3513_s5 + $0x10] sm:$0x1] }
 0x131   :  { %v2864_v51 = vpop.f32.mrf.mxu0 }
 0x132   :  { %v711_v53 = vmax.f32 %v707_v49, 0.0  ;;  %v705_v54 = vadd.f32 %v704_v44, %v700_v50  ;;  %v703_v55 = vadd.f32 %v2864_v51, %v604_v48  ;;  %v980_v50 = vld [vmem:[%s3513_s5 + $0x1] ss:$0 sm:$0xff] }
 0x133   :  { %v688_v56 = vpop.f32.mrf.mxu0 }
 0x134   :  { %715 = vst.msk [vmem:[#allocation2 + $0x10] sm:$0xff] %vm472_vm0, %v711_v53  ;;  %v709_v57 = vmax.f32 %v705_v54, 0.0  ;;  %v708_v58 = vadd.f32 %v704_v44, %v703_v55  ;;  %v701_v59 = vadd.f32 %v688_v56, %v596_v52 }
 0x136   :  { %713 = vst.msk [vmem:[#allocation2] sm:$0xff] %vm472_vm0, %v709_v57  ;;  %v712_v60 = vmax.f32 %v708_v58, 0.0  ;;  %v706_v61 = vadd.f32 %v704_v44, %v701_v59  ;;  %v985_v44 = vld [vmem:[%s3513_s5] sm:$0x80] }
 0x137   :  { %v988_v48 = vpack.c.bf16 %v986_v45, %v985_v44  ;;  %v3102_v44 = vld [vmem:[#allocation3 + $0x1e0] ss:$8 sps:$4 sm:$0xff]   ;;  %v3110_v45 = vld [vmem:[#allocation3 + $0x1d4] ss:$8 sps:$4 sm:$0xff]  }
 0x138   :  { %716 = vst.msk [vmem:[#allocation2 + $0x18] sm:$0xff] %vm472_vm0, %v712_v60  ;;  %v710_v62 = vmax.f32 %v706_v61, 0.0 }
 0x139   :  { %v990_v54 = vshrl.u32 %v988_v48, 16  ;;  %v993_v55 = vshll.u32 %v988_v48, 16  ;;  %v3114_v48 = vld [vmem:[#allocation3 + $0x1c0] ss:$8 sps:$4 sm:$0xff]  }
 0x13a   :  { %714 = vst.msk [vmem:[#allocation2 + $0x8] sm:$0xff] %vm472_vm0, %v710_v62 }
 0x13b   :  { %v992_v60 = vrot.slane %v990_v54, 3  ;;  %v995_v61 = vrot.slane %v993_v55, 4  ;;  %v3447_v54 = vld [vmem:[%s3508_s0] sm:$0x3f] }
 0x13c   :  { %v3132_v55 = vld [vmem:[#allocation3 + $0x190] ss:$8 sps:$4 sm:$0xff]  }
 0x13f   :  { %v739_v63 = vld [vmem:[#allocation2 + $0x12] ss:$2 sm:$0xff]  ;;  %v743_v0 = vld [vmem:[#allocation2 + $0x13] ss:$2 sm:$0xff] }
 0x140   :  { %v720_v1 = vld [vmem:[#allocation2 + $0x10] ss:$2 sm:$0xff]  ;;  %v724_v2 = vld [vmem:[#allocation2 + $0x11] ss:$2 sm:$0xff]  ;;  %v745_v7 = vmax.f32 %v739_v63, %v743_v0 }
 0x141   :  { %v737_v3 = vld [vmem:[#allocation2 + $0x2] ss:$2 sm:$0xff]  ;;  %v741_v4 = vld [vmem:[#allocation2 + $0x3] ss:$2 sm:$0xff]  ;;  %v726_v10 = vmax.f32 %v720_v1, %v724_v2  ;;  %v996_v2 = vor.u32 %v995_v61, %v992_v60 }
 0x142   :  { %v718_v5 = vld [vmem:[#allocation2] ss:$2 sm:$0xff]  ;;  %v744_v6 = vmax.f32 %v737_v3, %v741_v4  ;;  %v722_v8 = vld [vmem:[#allocation2 + $0x1] ss:$2 sm:$0xff] }
 0x143   :  { %v725_v9 = vmax.f32 %v718_v5, %v722_v8  ;;  %v892_v17 = vld [vmem:[#allocation2 + $0x4] ss:$2 sm:$0xff]  ;;  %v896_v18 = vld [vmem:[#allocation2 + $0x5] ss:$2 sm:$0xff]  ;;  %v894_v20 = vld [vmem:[#allocation2 + $0x14] ss:$2 sm:$0xff] }
 0x144   :  { %v754_v13 = vpack.c.bf16 %v745_v7, %v744_v6  ;;  %v898_v21 = vld [vmem:[#allocation2 + $0x15] ss:$2 sm:$0xff]  ;;  %v899_v22 = vmax.f32 %v892_v17, %v896_v18  ;;  %v3016_v5 = vld [vmem:[#allocation3 + $0x360] ss:$8 sps:$4 sm:$0xff]   ;;  %v3291_v6 = vmov 0  }
 0x145   :  { %v735_v14 = vpack.c.bf16 %v726_v10, %v725_v9  ;;  %v900_v23 = vmax.f32 %v894_v20, %v898_v21  ;;  %v3015_v0 = vld [vmem:[#allocation3 + $0x374] ss:$8 sps:$4 sm:$0xff]   ;;  %v3013_v3 = vld [vmem:[#allocation3 + $0x370] ss:$8 sps:$4 sm:$0xff]   ;;  %v3018_v4 = vld [vmem:[#allocation3 + $0x364] ss:$8 sps:$4 sm:$0xff]  }
 0x146   :  { %2874 = vmatmul.mubr.msk.bf16.vlgmr.msra.gmra.mxu1 %vm472_vm0, %v754_v13  ;;  %v3021_v7 = vld [vmem:[#allocation3 + $0x354] ss:$8 sps:$4 sm:$0xff]   ;;  %v3019_v8 = vld [vmem:[#allocation3 + $0x350] ss:$8 sps:$4 sm:$0xff]   ;;  %v3024_v9 = vld [vmem:[#allocation3 + $0x344] ss:$8 sps:$4 sm:$0xff]  }
 0x147   :  { %2886 = vmatmul.mubr.msk.bf16.vlgmr.msra.gmra.mxu0 %vm472_vm0, %v735_v14  ;;  %2890 = vmatpush3.bf16.msra.mxu1 %v3009_v12  ;;  %v909_v24 = vpack.c.bf16 %v900_v23, %v899_v22  ;;  %v3022_v10 = vld [vmem:[#allocation3 + $0x340] ss:$8 sps:$4 sm:$0xff]   ;;  %v3027_v12 = vld [vmem:[#allocation3 + $0x334] ss:$8 sps:$4 sm:$0xff]   ;;  %v3025_v13 = vld [vmem:[#allocation3 + $0x330] ss:$8 sps:$4 sm:$0xff]  }
 0x148   :  { %2891 = vmatprep.subr.bf16.mxu1 %v3289_v11  ;;  %2897 = vmatprep.mubr.msk.bf16.mxu1 %vm3290_vm1, %v3289_v11  ;;  %v3030_v14 = vld [vmem:[#allocation3 + $0x324] ss:$8 sps:$4 sm:$0xff]   ;;  %v3031_v17 = vld [vmem:[#allocation3 + $0x310] ss:$8 sps:$4 sm:$0xff]   ;;  %v419_v20 = vmax.f32 %v3404_v31, 0.0 }
 0x149   :  { %2903 = vmatprep.mubr.msk.bf16.mxu0 %vm3290_vm1, %v3289_v11  ;;  %v3036_v18 = vld [vmem:[#allocation3 + $0x304] ss:$8 sps:$4 sm:$0xff]   ;;  %v3047_v22 = vld [vmem:[#allocation3 + $0x74] ss:$8 sps:$4 sm:$0xff]   ;;  %v3066_v31 = vld [vmem:[#allocation3 + $0x140] ss:$8 sps:$4 sm:$0xff]  }
 0x14a   :  { %v1261_v21 = vpack.c.bf16 %v419_v20, %v419_v20  ;;  %v3050_v23 = vld [vmem:[#allocation3 + $0x174] ss:$8 sps:$4 sm:$0xff]  }
 0x14b   :  { %2892 = vmatpush3.bf16.msra.mxu1 %v3010_v15  ;;  %v3028_v15 = vld [vmem:[#allocation3 + $0x320] ss:$8 sps:$4 sm:$0xff]   ;;  %v3071_v20 = vld [vmem:[#allocation3 + $0x34] ss:$8 sps:$4 sm:$0xff]  }
 0x14c   :  { %2893 = vmatprep.subr.bf16.mxu1 %v3289_v11 }
 0x14f   :  { %2894 = vmatpush3.bf16.msra.mxu1 %v3011_v16  ;;  %v3033_v16 = vld [vmem:[#allocation3 + $0x314] ss:$8 sps:$4 sm:$0xff]  }
 0x150   :  { %2895 = vmatprep.subr.bf16.mxu1 %v3289_v11 }
 0x153   :  { %2896 = vmatpush3.bf16.msra.mxu1 %v3012_v19  ;;  %v3034_v19 = vld [vmem:[#allocation3 + $0x300] ss:$8 sps:$4 sm:$0xff]  }
 0x154   :  { %2907 = vmatprep.subr.bf16.mxu1 %v3289_v11 }
 0x156   :  { %2898 = vmatmul.mubr.msk.bf16.vlgmr.msra.gmra.mxu1 %vm472_vm0, %v909_v24  ;;  %v3048_v24 = vld [vmem:[#allocation3 + $0x170] ss:$8 sps:$4 sm:$0xff]  }
 0x157   :  { %2923 = vmatprep.mubr.msk.bf16.mxu1 %vm3290_vm1, %v3289_v11  ;;  %2908 = vmatpush3.bf16.msra.mxu1 %v3037_v25  ;;  %v3056_v25 = vld [vmem:[#allocation3 + $0x164] ss:$8 sps:$4 sm:$0xff]  }
 0x158   :  { %2909 = vmatprep.subr.bf16.mxu1 %v3289_v11 }
 0x15b   :  { %2910 = vmatpush3.bf16.msra.mxu1 %v3038_v26  ;;  %v3054_v26 = vld [vmem:[#allocation3 + $0x160] ss:$8 sps:$4 sm:$0xff]  }
 0x15c   :  { %2911 = vmatprep.subr.bf16.mxu1 %v3289_v11 }
 0x15f   :  { %2912 = vmatpush3.bf16.msra.mxu1 %v3039_v27  ;;  %v3062_v27 = vld [vmem:[#allocation3 + $0x154] ss:$8 sps:$4 sm:$0xff]  }
 0x160   :  { %2913 = vmatprep.subr.bf16.mxu1 %v3289_v11 }
 0x163   :  { %2914 = vmatpush3.bf16.msra.mxu1 %v3040_v28  ;;  %v3060_v28 = vld [vmem:[#allocation3 + $0x150] ss:$8 sps:$4 sm:$0xff]  }
 0x164   :  { %2915 = vmatprep.subr.bf16.mxu1 %v3289_v11 }
 0x167   :  { %2916 = vmatpush3.bf16.msra.mxu1 %v3041_v30  ;;  %v3068_v30 = vld [vmem:[#allocation3 + $0x144] ss:$8 sps:$4 sm:$0xff]  }
 0x168   :  { %2917 = vmatprep.subr.bf16.mxu1 %v3289_v11 }
 0x16b   :  { %2918 = vmatpush3.bf16.msra.mxu1 %v3042_v32  ;;  %v3074_v32 = vld [vmem:[#allocation3 + $0x134] ss:$8 sps:$4 sm:$0xff]  }
 0x16c   :  { %2919 = vmatprep.subr.bf16.mxu1 %v3289_v11 }
 0x16f   :  { %2920 = vmatpush3.bf16.msra.mxu1 %v3043_v33  ;;  %v3072_v33 = vld [vmem:[#allocation3 + $0x130] ss:$8 sps:$4 sm:$0xff]  }
 0x170   :  { %2921 = vmatprep.subr.bf16.mxu1 %v3289_v11 }
 0x173   :  { %2922 = vmatpush3.bf16.msra.mxu1 %v3044_v35  ;;  %v3080_v35 = vld [vmem:[#allocation3 + $0x124] ss:$8 sps:$4 sm:$0xff]  }
 0x174   :  { %1917 = vmatprep.subr.bf16.mxu1 %v3047_v22  ;;  %v3204_v22 = vld [vmem:[#allocation3 + $0x3b4] ss:$8 sps:$4 sm:$0xff]  }
 0x206   :  { %v816_v36 = vpop.f32.mrf.mxu1 }
 0x207   :  { %v884_v37 = vpop.f32.mrf.mxu0 }
 0x208   :  { %v2875_v38 = vpop.f32.mrf.mxu1  ;;  %v885_v46 = vadd.f32 %v884_v37, %v816_v36  ;;  %v3078_v36 = vld [vmem:[#allocation3 + $0x120] ss:$8 sps:$4 sm:$0xff]   ;;  %v3086_v37 = vld [vmem:[#allocation3 + $0x114] ss:$8 sps:$4 sm:$0xff]  }
 0x209   :  { %v2887_v39 = vpop.f32.mrf.mxu0  ;;  %v3084_v38 = vld [vmem:[#allocation3 + $0x110] ss:$8 sps:$4 sm:$0xff]  }
 0x20a   :  { %v819_v40 = vpop.f32.mrf.mxu1  ;;  %v3092_v39 = vld [vmem:[#allocation3 + $0x104] ss:$8 sps:$4 sm:$0xff]  }
 0x20b   :  { %v887_v41 = vpop.f32.mrf.mxu0 }
 0x20c   :  { %v2876_v42 = vpop.f32.mrf.mxu1  ;;  %v888_v52 = vadd.f32 %v887_v41, %v819_v40  ;;  %v3090_v40 = vld [vmem:[#allocation3 + $0x100] ss:$8 sps:$4 sm:$0xff]   ;;  %v3098_v41 = vld [vmem:[#allocation3 + $0x1f4] ss:$8 sps:$4 sm:$0xff]  }
 0x20d   :  { %v2888_v43 = vpop.f32.mrf.mxu0  ;;  %v3096_v42 = vld [vmem:[#allocation3 + $0x1f0] ss:$8 sps:$4 sm:$0xff]  }
 0x20e   :  { %v3104_v43 = vld [vmem:[#allocation3 + $0x1e4] ss:$8 sps:$4 sm:$0xff]  }
 0x216   :  { %v971_v47 = vpop.f32.mrf.mxu1 }
 0x217   :  { %v978_v49 = vadd.f32 %v971_v47, %v885_v46  ;;  %v3108_v46 = vld [vmem:[#allocation3 + $0x1d0] ss:$8 sps:$4 sm:$0xff]   ;;  %v3116_v47 = vld [vmem:[#allocation3 + $0x1c4] ss:$8 sps:$4 sm:$0xff]  }
 0x218   :  { %v2899_v51 = vpop.f32.mrf.mxu1 }
 0x219   :  { %v981_v56 = vadd.f32 %v980_v50, %v978_v49  ;;  %v3122_v49 = vld [vmem:[#allocation3 + $0x1b4] ss:$8 sps:$4 sm:$0xff]   ;;  %v3128_v51 = vld [vmem:[#allocation3 + $0x1a4] ss:$8 sps:$4 sm:$0xff]  }
 0x21a   :  { %v974_v53 = vpop.f32.mrf.mxu1 }
 0x21b   :  { %v979_v57 = vadd.f32 %v974_v53, %v888_v52  ;;  %v983_v62 = vmax.f32 %v981_v56, 0.0  ;;  %v3126_v52 = vld [vmem:[#allocation3 + $0x1a0] ss:$8 sps:$4 sm:$0xff]   ;;  %v3134_v53 = vld [vmem:[#allocation3 + $0x194] ss:$8 sps:$4 sm:$0xff]   ;;  %v1391_v56 = vrot.slane %v3447_v54, %v3336_v34 }
 0x21c   :  { %v2900_v58 = vpop.f32.mrf.mxu1 }
 0x21d   :  { %v982_v59 = vadd.f32 %v980_v50, %v979_v57  ;;  %v3120_v50 = vld [vmem:[#allocation3 + $0x1b0] ss:$8 sps:$4 sm:$0xff]   ;;  %v1399_v57 = vcombine.high %v1391_v56, %v1391_v56  ;;  %v3140_v58 = vld [vmem:[#allocation3 + $0x184] ss:$8 sps:$4 sm:$0xff]   ;;  %v3453_v61 = vrot.slane %v1391_v56, %v3336_v34 }
 0x21e   :  { %v3129_v56 = vld [vmem:[#allocation3 + $0x90] ss:$8 sps:$4 sm:$0xff]  }
 0x21f   :  { %v984_v63 = vmax.f32 %v982_v59, 0.0  ;;  %v3138_v59 = vld [vmem:[#allocation3 + $0x180] ss:$8 sps:$4 sm:$0xff]   ;;  %v1421_v60 = vrot.slane %v1399_v57, %v3336_v34 }
 0x221   :  { %v987_v1 = vpack.c.bf16 %v984_v63, %v983_v62  ;;  %v1430_v62 = vcombine.high %v1421_v60, %v1421_v60  ;;  %v1429_v63 = vcombine.high %v3453_v61, %v3453_v61 }
 0x223   :  { %2902 = vmatpush3.bf16.msra.mxu0 %v987_v1  ;;  %v3045_v1 = vld [vmem:[#allocation3 + $0x70] ss:$8 sps:$4 sm:$0xff]  }
 0x224   :  { %1342 = vmatprep.subr.bf16.mxu0 %v3015_v0 }
 0x226   :  { %2904 = vmatmul.mubr.msk.bf16.vlgmr.msra.gmra.mxu0 %vm997_vm2, %v996_v2 }
 0x227   :  { %1343 = vmatpush1.bf16.msra.mxu0 %v3013_v3  ;;  %1374 = vmatprep.mubr.bf16.mxu0 %v3291_v6  ;;  %v3053_v3 = vld [vmem:[#allocation3 + $0x64] ss:$8 sps:$4 sm:$0xff]  }
 0x228   :  { %1344 = vmatprep.subr.bf16.mxu0 %v3018_v4 }
 0x22b   :  { %1345 = vmatpush1.bf16.msra.mxu0 %v3016_v5  ;;  %v3190_v5 = vld [vmem:[#allocation3 + $0x3f0] ss:$8 sps:$4 sm:$0xff]  }
 0x22c   :  { %1346 = vmatprep.subr.bf16.mxu0 %v3021_v7  ;;  %v3192_v7 = vld [vmem:[#allocation3 + $0x3f4] ss:$8 sps:$4 sm:$0xff]  }
 0x22f   :  { %1347 = vmatpush1.bf16.msra.mxu0 %v3019_v8 }
 0x230   :  { %1348 = vmatprep.subr.bf16.mxu0 %v3024_v9  ;;  %v3051_v9 = vld [vmem:[#allocation3 + $0x60] ss:$8 sps:$4 sm:$0xff]  }
 0x233   :  { %1349 = vmatpush1.bf16.msra.mxu0 %v3022_v10  ;;  %v3195_v10 = vld [vmem:[#allocation3 + $0x3e4] ss:$8 sps:$4 sm:$0xff]  }
 0x234   :  { %1350 = vmatprep.subr.bf16.mxu0 %v3027_v12  ;;  %v3059_v12 = vld [vmem:[#allocation3 + $0x54] ss:$8 sps:$4 sm:$0xff]  }
 0x237   :  { %1351 = vmatpush1.bf16.msra.mxu0 %v3025_v13 }
 0x238   :  { %1352 = vmatprep.subr.bf16.mxu0 %v3030_v14  ;;  %v3193_v14 = vld [vmem:[#allocation3 + $0x3e0] ss:$8 sps:$4 sm:$0xff]  }
 0x23b   :  { %1353 = vmatpush1.bf16.msra.mxu0 %v3028_v15  ;;  %v3057_v15 = vld [vmem:[#allocation3 + $0x50] ss:$8 sps:$4 sm:$0xff]  }
 0x23c   :  { %1354 = vmatprep.subr.bf16.mxu0 %v3033_v16  ;;  %v3065_v16 = vld [vmem:[#allocation3 + $0x44] ss:$8 sps:$4 sm:$0xff]  }
 0x23f   :  { %1355 = vmatpush1.bf16.msra.mxu0 %v3031_v17  ;;  %v3196_v17 = vld [vmem:[#allocation3 + $0x3d0] ss:$8 sps:$4 sm:$0xff]  }
 0x240   :  { %1356 = vmatprep.subr.bf16.mxu0 %v3036_v18  ;;  %v3201_v18 = vld [vmem:[#allocation3 + $0x3c4] ss:$8 sps:$4 sm:$0xff]  }
 0x243   :  { %1357 = vmatpush1.bf16.msra.mxu0 %v3034_v19  ;;  %v3063_v19 = vld [vmem:[#allocation3 + $0x40] ss:$8 sps:$4 sm:$0xff]  }
 0x244   :  { %1958 = vmatprep.subr.bf16.mxu0 %v3050_v23  ;;  %v3069_v23 = vld [vmem:[#allocation3 + $0x30] ss:$8 sps:$4 sm:$0xff]  }
 0x246   :  { %1375 = vmatmul.mubr.bf16.vlgmr.msra.gmra.mxu0 %v1261_v21  ;;  %v3199_v21 = vld [vmem:[#allocation3 + $0x3c0] ss:$8 sps:$4 sm:$0xff]  }
 0x247   :  { %1959 = vmatpush1.bf16.msra.mxu0 %v3048_v24  ;;  %1990 = vmatprep.mubr.bf16.mxu0 %v1430_v62  ;;  %v3077_v24 = vld [vmem:[#allocation3 + $0x24] ss:$8 sps:$4 sm:$0xff]   ;;  %v3143_v62 = vld [vmem:[#allocation3 + $0x274] ss:$8 sps:$4 sm:$0xff]  }
 0x248   :  { %1960 = vmatprep.subr.bf16.mxu0 %v3056_v25  ;;  %v3202_v25 = vld [vmem:[#allocation3 + $0x3b0] ss:$8 sps:$4 sm:$0xff]  }
 0x24b   :  { %1961 = vmatpush1.bf16.msra.mxu0 %v3054_v26  ;;  %v3207_v26 = vld [vmem:[#allocation3 + $0x3a4] ss:$8 sps:$4 sm:$0xff]  }
 0x24c   :  { %1962 = vmatprep.subr.bf16.mxu0 %v3062_v27  ;;  %v3075_v27 = vld [vmem:[#allocation3 + $0x20] ss:$8 sps:$4 sm:$0xff]  }
 0x24f   :  { %1963 = vmatpush1.bf16.msra.mxu0 %v3060_v28  ;;  %v3083_v28 = vld [vmem:[#allocation3 + $0x14] ss:$8 sps:$4 sm:$0xff]  }
 0x250   :  { %1964 = vmatprep.subr.bf16.mxu0 %v3068_v30  ;;  %v3205_v30 = vld [vmem:[#allocation3 + $0x3a0] ss:$8 sps:$4 sm:$0xff]  }
 0x253   :  { %1965 = vmatpush1.bf16.msra.mxu0 %v3066_v31  ;;  %v3210_v31 = vld [vmem:[#allocation3 + $0x394] ss:$8 sps:$4 sm:$0xff]  }
 0x254   :  { %1966 = vmatprep.subr.bf16.mxu0 %v3074_v32  ;;  %v3081_v32 = vld [vmem:[#allocation3 + $0x10] ss:$8 sps:$4 sm:$0xff]  }
 0x257   :  { %1967 = vmatpush1.bf16.msra.mxu0 %v3072_v33  ;;  %v3089_v33 = vld [vmem:[#allocation3 + $0x4] ss:$8 sps:$4 sm:$0xff]  }
 0x258   :  { %1968 = vmatprep.subr.bf16.mxu0 %v3080_v35  ;;  %v3208_v35 = vld [vmem:[#allocation3 + $0x390] ss:$8 sps:$4 sm:$0xff]  }
 0x25b   :  { %1969 = vmatpush1.bf16.msra.mxu0 %v3078_v36  ;;  %v3087_v36 = vld [vmem:[#allocation3] ss:$8 sps:$4 sm:$0xff]  }
 0x25c   :  { %1970 = vmatprep.subr.bf16.mxu0 %v3086_v37  ;;  %v3095_v37 = vld [vmem:[#allocation3 + $0xf4] ss:$8 sps:$4 sm:$0xff]  }
 0x25f   :  { %1971 = vmatpush1.bf16.msra.mxu0 %v3084_v38 }
 0x260   :  { %1972 = vmatprep.subr.bf16.mxu0 %v3092_v39  ;;  %v3093_v39 = vld [vmem:[#allocation3 + $0xf0] ss:$8 sps:$4 sm:$0xff]  }
 0x263   :  { %1973 = vmatpush1.bf16.msra.mxu0 %v3090_v40  ;;  %v3101_v40 = vld [vmem:[#allocation3 + $0xe4] ss:$8 sps:$4 sm:$0xff]  }
 0x264   :  { %1974 = vmatprep.subr.bf16.mxu0 %v3098_v41 }
 0x267   :  { %1975 = vmatpush2.bf16.msra.mxu0 %v3096_v42 }
 0x268   :  { %1976 = vmatprep.subr.bf16.mxu0 %v3104_v43  ;;  %v3099_v43 = vld [vmem:[#allocation3 + $0xe0] ss:$8 sps:$4 sm:$0xff]  }
 0x26b   :  { %1977 = vmatpush2.bf16.msra.mxu0 %v3102_v44  ;;  %v3107_v44 = vld [vmem:[#allocation3 + $0xd4] ss:$8 sps:$4 sm:$0xff]  }
 0x26c   :  { %1978 = vmatprep.subr.bf16.mxu0 %v3110_v45 }
 0x26f   :  { %1979 = vmatpush2.bf16.msra.mxu0 %v3108_v46  ;;  %v3105_v46 = vld [vmem:[#allocation3 + $0xd0] ss:$8 sps:$4 sm:$0xff]  }
 0x270   :  { %1980 = vmatprep.subr.bf16.mxu0 %v3116_v47  ;;  %v3113_v47 = vld [vmem:[#allocation3 + $0xc4] ss:$8 sps:$4 sm:$0xff]  }
 0x273   :  { %1981 = vmatpush2.bf16.msra.mxu0 %v3114_v48  ;;  %v3111_v48 = vld [vmem:[#allocation3 + $0xc0] ss:$8 sps:$4 sm:$0xff]  }
 0x274   :  { %1982 = vmatprep.subr.bf16.mxu0 %v3122_v49  ;;  %v3119_v49 = vld [vmem:[#allocation3 + $0xb4] ss:$8 sps:$4 sm:$0xff]  }
 0x277   :  { %1983 = vmatpush2.bf16.msra.mxu0 %v3120_v50  ;;  %v3117_v50 = vld [vmem:[#allocation3 + $0xb0] ss:$8 sps:$4 sm:$0xff]  }
 0x278   :  { %1984 = vmatprep.subr.bf16.mxu0 %v3128_v51  ;;  %v3125_v51 = vld [vmem:[#allocation3 + $0xa4] ss:$8 sps:$4 sm:$0xff]  }
 0x27b   :  { %1985 = vmatpush2.bf16.msra.mxu0 %v3126_v52  ;;  %v3123_v52 = vld [vmem:[#allocation3 + $0xa0] ss:$8 sps:$4 sm:$0xff]  }
 0x27c   :  { %1986 = vmatprep.subr.bf16.mxu0 %v3134_v53  ;;  %v1384_v53 = vcombine.high %v3447_v54, %v3447_v54 }
 0x27e   :  { %v3465_v57 = vrot.slane %v1384_v53, %v3336_v34  ;;  %v3219_v53 = vld [vmem:[#allocation5 + $0x228] sm:$0xff]  }
 0x27f   :  { %1987 = vmatpush2.bf16.msra.mxu0 %v3132_v55  ;;  %v3131_v55 = vld [vmem:[#allocation3 + $0x94] ss:$8 sps:$4 sm:$0xff]  }
 0x280   :  { %1988 = vmatprep.subr.bf16.mxu0 %v3140_v58  ;;  %v3137_v58 = vld [vmem:[#allocation3 + $0x84] ss:$8 sps:$4 sm:$0xff]  }
 0x283   :  { %1989 = vmatpush2.bf16.msra.mxu0 %v3138_v59  ;;  %v3135_v59 = vld [vmem:[#allocation3 + $0x80] ss:$8 sps:$4 sm:$0xff]  }
 0x284   :  { %2137 = vmatprep.subr.bf16.mxu0 %v3192_v7  ;;  %v3152_v7 = vld [vmem:[#allocation3 + $0x244] ss:$8 sps:$4 sm:$0xff]  }
 0x286   :  { %1991 = vmatmul.mubr.bf16.vlgmr.msra.gmra.mxu0 %v1429_v63  ;;  %v3141_v63 = vld [vmem:[#allocation3 + $0x270] ss:$8 sps:$4 sm:$0xff]  }
 0x287   :  { %2169 = vmatprep.mubr.bf16.mxu0 %v3291_v6  ;;  %2138 = vmatpush1.bf16.msra.mxu0 %v3190_v5  ;;  %v3198_v6 = vld [vmem:[#allocation3 + $0x3d4] ss:$8 sps:$4 sm:$0xff]   ;;  %v3147_v5 = vld [vmem:[#allocation3 + $0x250] ss:$8 sps:$4 sm:$0xff]  }
 0x288   :  { %2139 = vmatprep.subr.bf16.mxu0 %v3195_v10  ;;  %v3153_v10 = vld [vmem:[#allocation3 + $0x230] ss:$8 sps:$4 sm:$0xff]  }
 0x28b   :  { %2140 = vmatpush1.bf16.msra.mxu0 %v3193_v14  ;;  %v3159_v14 = vld [vmem:[#allocation3 + $0x210] ss:$8 sps:$4 sm:$0xff]  }
 0x28c   :  { %2141 = vmatprep.subr.bf16.mxu0 %v3198_v6  ;;  %v3164_v6 = vld [vmem:[#allocation3 + $0x204] ss:$8 sps:$4 sm:$0xff]  }
 0x28f   :  { %2142 = vmatpush1.bf16.msra.mxu0 %v3196_v17  ;;  %v3165_v17 = vld [vmem:[#allocation3 + $0x2f0] ss:$8 sps:$4 sm:$0xff]  }
 0x290   :  { %2143 = vmatprep.subr.bf16.mxu0 %v3201_v18  ;;  %v3170_v18 = vld [vmem:[#allocation3 + $0x2e4] ss:$8 sps:$4 sm:$0xff]  }
 0x293   :  { %2144 = vmatpush1.bf16.msra.mxu0 %v3199_v21  ;;  %v3171_v21 = vld [vmem:[#allocation3 + $0x2d0] ss:$8 sps:$4 sm:$0xff]  }
 0x294   :  { %2145 = vmatprep.subr.bf16.mxu0 %v3204_v22  ;;  %v3176_v22 = vld [vmem:[#allocation3 + $0x2c4] ss:$8 sps:$4 sm:$0xff]  }
 0x297   :  { %2146 = vmatpush1.bf16.msra.mxu0 %v3202_v25  ;;  %v3177_v25 = vld [vmem:[#allocation3 + $0x2b0] ss:$8 sps:$4 sm:$0xff]  }
 0x298   :  { %2147 = vmatprep.subr.bf16.mxu0 %v3207_v26  ;;  %v3182_v26 = vld [vmem:[#allocation3 + $0x2a4] ss:$8 sps:$4 sm:$0xff]  }
 0x29b   :  { %2148 = vmatpush1.bf16.msra.mxu0 %v3205_v30  ;;  %v3183_v30 = vld [vmem:[#allocation3 + $0x290] ss:$8 sps:$4 sm:$0xff]  }
 0x29c   :  { %2149 = vmatprep.subr.bf16.mxu0 %v3210_v31  ;;  %v3188_v31 = vld [vmem:[#allocation3 + $0x284] ss:$8 sps:$4 sm:$0xff]  }
 0x29f   :  { %2150 = vmatpush1.bf16.msra.mxu0 %v3208_v35 }
 0x2e6   :  { %v1035_v0 = vpop.f32.mrf.mxu0 }
 0x2e7   :  { %v1057_v2 = vpack.c.bf16 %v1035_v0, %v1035_v0  ;;  %v3146_v0 = vld [vmem:[#allocation3 + $0x264] ss:$8 sps:$4 sm:$0xff]  }
 0x2e8   :  { %v2905_v4 = vpop.f32.mrf.mxu0 }
 0x2e9   :  { %2924 = vmatmul.mubr.bf16.vlgmr.msra.gmra.mxu1 %v1057_v2  ;;  %v3149_v2 = vld [vmem:[#allocation3 + $0x254] ss:$8 sps:$4 sm:$0xff]   ;;  %v3211_v4 = vld [vmem:[#allocation3 + $0x380] ss:$8 sps:$4 sm:$0xff]  }
 0x2ea   :  { %1918 = vmatpush1.bf16.msra.mxu1 %v3045_v1  ;;  %v1038_v8 = vpop.f32.mrf.mxu0  ;;  %1949 = vmatprep.mubr.bf16.mxu1 %v1421_v60  ;;  %v1400_v60 = vcombine.high %v3465_v57, %v3465_v57  ;;  %v3144_v1 = vld [vmem:[#allocation3 + $0x260] ss:$8 sps:$4 sm:$0xff]  }
 0x2eb   :  { %1919 = vmatprep.subr.bf16.mxu1 %v3053_v3  ;;  %v3213_v3 = vld [vmem:[#allocation3 + $0x384] ss:$8 sps:$4 sm:$0xff]   ;;  %v3150_v8 = vld [vmem:[#allocation3 + $0x240] ss:$8 sps:$4 sm:$0xff]  }
 0x2ec   :  { %v2906_v13 = vpop.f32.mrf.mxu0  ;;  %v1428_v54 = vrot.slane %v1400_v60, %v3336_v34  ;;  %2151 = vmatprep.subr.bf16.mxu0 %v3213_v3  ;;  %v3228_v3 = vld [vmem:[#allocation5 + $0x240] sm:$0xff]  }
 0x2ed   :  { %2152 = vmatpush1.bf16.msra.mxu0 %v3211_v4  ;;  %v3161_v13 = vld [vmem:[#allocation3 + $0x214] ss:$8 sps:$4 sm:$0xff]   ;;  %v3229_v4 = vld [vmem:[#allocation5 + $0x200] sm:$0xff]  }
 0x2ee   :  { %1920 = vmatpush1.bf16.msra.mxu1 %v3051_v9  ;;  %v3155_v9 = vld [vmem:[#allocation3 + $0x234] ss:$8 sps:$4 sm:$0xff]  }
 0x2ef   :  { %1921 = vmatprep.subr.bf16.mxu1 %v3059_v12  ;;  %v3156_v12 = vld [vmem:[#allocation3 + $0x220] ss:$8 sps:$4 sm:$0xff]  }
 0x2f2   :  { %1922 = vmatpush1.bf16.msra.mxu1 %v3057_v15  ;;  %v3162_v15 = vld [vmem:[#allocation3 + $0x200] ss:$8 sps:$4 sm:$0xff]  }
 0x2f3   :  { %1923 = vmatprep.subr.bf16.mxu1 %v3065_v16  ;;  %v3167_v16 = vld [vmem:[#allocation3 + $0x2f4] ss:$8 sps:$4 sm:$0xff]  }
 0x2f6   :  { %1924 = vmatpush1.bf16.msra.mxu1 %v3063_v19  ;;  %v3168_v19 = vld [vmem:[#allocation3 + $0x2e0] ss:$8 sps:$4 sm:$0xff]  }
 0x2f7   :  { %1925 = vmatprep.subr.bf16.mxu1 %v3071_v20  ;;  %v3173_v20 = vld [vmem:[#allocation3 + $0x2d4] ss:$8 sps:$4 sm:$0xff]  }
 0x2fa   :  { %1926 = vmatpush1.bf16.msra.mxu1 %v3069_v23  ;;  %v3174_v23 = vld [vmem:[#allocation3 + $0x2c0] ss:$8 sps:$4 sm:$0xff]  }
 0x2fb   :  { %1927 = vmatprep.subr.bf16.mxu1 %v3077_v24  ;;  %v3179_v24 = vld [vmem:[#allocation3 + $0x2b4] ss:$8 sps:$4 sm:$0xff]  }
 0x2fe   :  { %1928 = vmatpush1.bf16.msra.mxu1 %v3075_v27  ;;  %v3180_v27 = vld [vmem:[#allocation3 + $0x2a0] ss:$8 sps:$4 sm:$0xff]  }
 0x2ff   :  { %1929 = vmatprep.subr.bf16.mxu1 %v3083_v28  ;;  %v3185_v28 = vld [vmem:[#allocation3 + $0x294] ss:$8 sps:$4 sm:$0xff]  }
 0x302   :  { %1930 = vmatpush1.bf16.msra.mxu1 %v3081_v32  ;;  %v3186_v32 = vld [vmem:[#allocation3 + $0x280] ss:$8 sps:$4 sm:$0xff]  }
 0x303   :  { %1931 = vmatprep.subr.bf16.mxu1 %v3089_v33  ;;  %v1414_v33 = vrot.slane %v3465_v57, %v3336_v34  ;;  %v3222_v57 = vld [vmem:[#allocation5 + $0x258] sm:$0xff]  }
 0x306   :  { %1932 = vmatpush1.bf16.msra.mxu1 %v3087_v36  ;;  %v3458_v38 = vpop.f32.mrf.mxu0 }
 0x307   :  { %1933 = vmatprep.subr.bf16.mxu1 %v3095_v37 }
 0x308   :  { %v3460_v41 = vpop.f32.mrf.mxu0 }
 0x30a   :  { %1934 = vmatpush2.bf16.msra.mxu1 %v3093_v39  ;;  %v1380_v42 = vpop.f32.mrf.mxu0 }
 0x30b   :  { %1935 = vmatprep.subr.bf16.mxu1 %v3101_v40  ;;  %v1058_v40 = vld [vmem:[%s3513_s5 + $0x2] ss:$0 sm:$0xff] }
 0x30c   :  { %v1381_v45 = vpop.f32.mrf.mxu0 }
 0x30d   :  { %v3214_v45 = vld [vmem:[#allocation5 + $0x278] sm:$0xff]  }
 0x30e   :  { %1936 = vmatpush2.bf16.msra.mxu1 %v3099_v43  ;;  %2798 = vmatprep.subr.bf16.mxu0 %v3214_v45 }
 0x30f   :  { %1937 = vmatprep.subr.bf16.mxu1 %v3107_v44 }
 0x312   :  { %1938 = vmatpush2.bf16.msra.mxu1 %v3105_v46 }
 0x313   :  { %1939 = vmatprep.subr.bf16.mxu1 %v3113_v47  ;;  %v3215_v47 = vld [vmem:[#allocation5 + $0x238] sm:$0xff]  }
 0x316   :  { %1940 = vmatpush2.bf16.msra.mxu1 %v3111_v48 }
 0x317   :  { %1941 = vmatprep.subr.bf16.mxu1 %v3119_v49  ;;  %v3216_v49 = vld [vmem:[#allocation5 + $0x270] sm:$0xff]  }
 0x31a   :  { %1942 = vmatpush2.bf16.msra.mxu1 %v3117_v50 }
 0x31b   :  { %1943 = vmatprep.subr.bf16.mxu1 %v3125_v51  ;;  %v3217_v51 = vld [vmem:[#allocation5 + $0x230] sm:$0xff]  }
 0x31e   :  { %1944 = vmatpush2.bf16.msra.mxu1 %v3123_v52  ;;  %v3218_v52 = vld [vmem:[#allocation5 + $0x268] sm:$0xff]  }
 0x31f   :  { %1945 = vmatprep.subr.bf16.mxu1 %v3131_v55  ;;  %v3220_v55 = vld [vmem:[#allocation5 + $0x260] sm:$0xff]  }
 0x322   :  { %1946 = vmatpush2.bf16.msra.mxu1 %v3129_v56  ;;  %v3221_v56 = vld [vmem:[#allocation5 + $0x220] sm:$0xff]  }
 0x323   :  { %1947 = vmatprep.subr.bf16.mxu1 %v3137_v58  ;;  %v3223_v58 = vld [vmem:[#allocation5 + $0x218] sm:$0xff]  }
 0x326   :  { %1948 = vmatpush2.bf16.msra.mxu1 %v3135_v59 }
 0x327   :  { %1999 = vmatprep.subr.bf16.mxu1 %v3143_v62 }
 0x329   :  { %1950 = vmatmul.mubr.bf16.vlgmr.msra.gmra.mxu1 %v3453_v61  ;;  %v3158_v61 = vld [vmem:[#allocation3 + $0x224] ss:$8 sps:$4 sm:$0xff]  }
 0x32a   :  { %2000 = vmatpush1.bf16.msra.mxu1 %v3141_v63  ;;  %2031 = vmatprep.mubr.bf16.mxu1 %v1428_v54  ;;  %v3224_v54 = vld [vmem:[#allocation5 + $0x250] sm:$0xff]  }
 0x32b   :  { %2001 = vmatprep.subr.bf16.mxu1 %v3146_v0  ;;  %v3225_v0 = vld [vmem:[#allocation5 + $0x210] sm:$0xff]  }
 0x32e   :  { %2002 = vmatpush1.bf16.msra.mxu1 %v3144_v1  ;;  %v3226_v1 = vld [vmem:[#allocation5 + $0x248] sm:$0xff]  }
 0x32f   :  { %2003 = vmatprep.subr.bf16.mxu1 %v3149_v2  ;;  %v3227_v2 = vld [vmem:[#allocation5 + $0x208] sm:$0xff]  }
 0x332   :  { %2004 = vmatpush1.bf16.msra.mxu1 %v3147_v5  ;;  %v3230_v5 = vld [vmem:[#allocation5 + $0x2b8] sm:$0xff]  }
 0x333   :  { %2005 = vmatprep.subr.bf16.mxu1 %v3152_v7  ;;  %v3231_v7 = vld [vmem:[#allocation5 + $0x2b0] sm:$0xff]  }
 0x336   :  { %2006 = vmatpush1.bf16.msra.mxu1 %v3150_v8  ;;  %v3232_v8 = vld [vmem:[#allocation5 + $0x2a8] sm:$0xff]  }
 0x337   :  { %2007 = vmatprep.subr.bf16.mxu1 %v3155_v9  ;;  %v3233_v9 = vld [vmem:[#allocation5 + $0x2a0] sm:$0xff]  }
 0x33a   :  { %2008 = vmatpush1.bf16.msra.mxu1 %v3153_v10  ;;  %v3234_v10 = vld [vmem:[#allocation5 + $0x298] sm:$0xff]  }
 0x33b   :  { %2009 = vmatprep.subr.bf16.mxu1 %v3158_v61 }
 0x33e   :  { %2010 = vmatpush1.bf16.msra.mxu1 %v3156_v12 }
 0x33f   :  { %2011 = vmatprep.subr.bf16.mxu1 %v3161_v13 }
 0x342   :  { %2012 = vmatpush1.bf16.msra.mxu1 %v3159_v14 }
 0x343   :  { %2013 = vmatprep.subr.bf16.mxu1 %v3164_v6 }
 0x346   :  { %2014 = vmatpush1.bf16.msra.mxu1 %v3162_v15  ;;  %v3476_v35 = vpop.f32.mrf.mxu0 }
 0x347   :  { %2015 = vmatprep.subr.bf16.mxu1 %v3167_v16 }
 0x348   :  { %v3478_v36 = vpop.f32.mrf.mxu0 }
 0x34a   :  { %2016 = vmatpush2.bf16.msra.mxu1 %v3165_v17  ;;  %v1996_v37 = vpop.f32.mrf.mxu0 }
 0x34b   :  { %2017 = vmatprep.subr.bf16.mxu1 %v3170_v18  ;;  %v3235_v37 = vld [vmem:[#allocation5 + $0x290] sm:$0xff]  }
 0x34c   :  { %v1997_v39 = vpop.f32.mrf.mxu0 }
 0x34d   :  { %v3237_v39 = vld [vmem:[#allocation5 + $0x280] sm:$0xff]  }
 0x34e   :  { %2018 = vmatpush2.bf16.msra.mxu1 %v3168_v19 }
 0x34f   :  { %2019 = vmatprep.subr.bf16.mxu1 %v3173_v20  ;;  %v2185_v20 = vsub.s32 0, %v3333_v29 }
 0x352   :  { %2020 = vmatpush2.bf16.msra.mxu1 %v3171_v21  ;;  %v2685_v21 = vld [vmem:[%s3513_s5 + $0x4] ss:$8 sm:$0x3] }
 0x353   :  { %2021 = vmatprep.subr.bf16.mxu1 %v3176_v22  ;;  %v2186_v22 = vrot.slane %v2685_v21, %v2185_v20 }
 0x356   :  { %2022 = vmatpush2.bf16.msra.mxu1 %v3174_v23 }
 0x357   :  { %2023 = vmatprep.subr.bf16.mxu1 %v3179_v24 }
 0x35a   :  { %2024 = vmatpush2.bf16.msra.mxu1 %v3177_v25 }
 0x35b   :  { %2025 = vmatprep.subr.bf16.mxu1 %v3182_v26 }
 0x35e   :  { %2026 = vmatpush2.bf16.msra.mxu1 %v3180_v27 }
 0x35f   :  { %2027 = vmatprep.subr.bf16.mxu1 %v3185_v28 }
 0x362   :  { %2028 = vmatpush2.bf16.msra.mxu1 %v3183_v30 }
 0x363   :  { %2029 = vmatprep.subr.bf16.mxu1 %v3188_v31 }
 0x366   :  { %2030 = vmatpush2.bf16.msra.mxu1 %v3186_v32 }
 0x367   :  { %2927 = vmatprep.subr.bf16.mxu1 %v3289_v11 }
 0x369   :  { %2032 = vmatmul.mubr.bf16.vlgmr.msra.gmra.mxu1 %v1414_v33 }
 0x36a   :  { %2943 = vmatprep.mubr.msk.bf16.mxu1 %vm3290_vm1, %v3289_v11  ;;  %2928 = vmatpush3.bf16.msra.mxu1 %v3230_v5 }
 0x36b   :  { %2929 = vmatprep.subr.bf16.mxu1 %v3289_v11 }
 0x36e   :  { %2930 = vmatpush3.bf16.msra.mxu1 %v3231_v7 }
 0x36f   :  { %2931 = vmatprep.subr.bf16.mxu1 %v3289_v11 }
 0x372   :  { %2932 = vmatpush3.bf16.msra.mxu1 %v3232_v8 }
 0x373   :  { %2933 = vmatprep.subr.bf16.mxu1 %v3289_v11 }
 0x376   :  { %2934 = vmatpush3.bf16.msra.mxu1 %v3233_v9 }
 0x377   :  { %2935 = vmatprep.subr.bf16.mxu1 %v3289_v11 }
 0x37a   :  { %2936 = vmatpush3.bf16.msra.mxu1 %v3234_v10 }
 0x37b   :  { %2937 = vmatprep.subr.bf16.mxu1 %v3289_v11 }
 0x37e   :  { %2938 = vmatpush3.bf16.msra.mxu1 %v3235_v37 }
 0x37f   :  { %2939 = vmatprep.subr.bf16.mxu1 %v3289_v11 }
 0x3a9   :  { %v1141_v42 = vpop.f32.mrf.mxu1 }
 0x3aa   :  { %v1142_v43 = vadd.f32 %v1141_v42, %v1058_v40  ;;  %v2231_v42 = vld [vmem:[%s3513_s5 + $0x5] ss:$0 sm:$0xff] }
 0x3ab   :  { %v2925_v34 = vpop.f32.mrf.mxu1 }
 0x3ac   :  { %v1147_v44 = vmax.f32 %v1142_v43, 0.0 }
 0x3ad   :  { %v1144_v46 = vpop.f32.mrf.mxu1 }
 0x3ae   :  { %v2056_v48 = vpack.c.bf16 %v1147_v44, %v1147_v44 }
 0x3af   :  { %v2926_v50 = vpop.f32.mrf.mxu1 }
 0x3b0   :  { %2170 = vmatmul.mubr.bf16.vlgmr.msra.gmra.mxu0 %v2056_v48 }
 0x3b1   :  { %2799 = vmatpush3.bf16.msra.mxu0 %v3215_v47 }
 0x3b2   :  { %2800 = vmatprep.subr.bf16.mxu0 %v3216_v49  ;;  %v2386_v49 = vld [vmem:[%s3513_s5 + $0x6] ss:$0 sm:$0xff] }
 0x3b5   :  { %2801 = vmatpush3.bf16.msra.mxu0 %v3217_v51 }
 0x3b6   :  { %2802 = vmatprep.subr.bf16.mxu0 %v3218_v52 }
 0x3b9   :  { %2803 = vmatpush3.bf16.msra.mxu0 %v3219_v53 }
 0x3ba   :  { %2804 = vmatprep.subr.bf16.mxu0 %v3220_v55 }
 0x3bd   :  { %2805 = vmatpush3.bf16.msra.mxu0 %v3221_v56 }
 0x3be   :  { %2806 = vmatprep.subr.bf16.mxu0 %v3222_v57 }
 0x3c1   :  { %2807 = vmatpush3.bf16.msra.mxu0 %v3223_v58 }
 0x3c2   :  { %2808 = vmatprep.subr.bf16.mxu0 %v3224_v54 }
 0x3c5   :  { %2809 = vmatpush3.bf16.msra.mxu0 %v3225_v0 }
 0x3c6   :  { %2810 = vmatprep.subr.bf16.mxu0 %v3226_v1 }
 0x3c9   :  { %2811 = vmatpush3.bf16.msra.mxu0 %v3227_v2 }
 0x3ca   :  { %2812 = vmatprep.subr.bf16.mxu0 %v3228_v3 }
 0x3cd   :  { %2813 = vmatpush3.bf16.msra.mxu0 %v3229_v4 }
 0x3e9   :  { %v1951_v59 = vpop.f32.mrf.mxu1 }
 0x3ea   :  { %v1952_v61 = vadd.f32 %v1951_v59, %v3458_v38  ;;  %v2189_v38 = vsub.s32 1, %v3333_v29  ;;  %v3236_v29 = vld [vmem:[#allocation5 + $0x288] sm:$0xff]  }
 0x3eb   :  { %v1953_v60 = vpop.f32.mrf.mxu1  ;;  %2940 = vmatpush3.bf16.msra.mxu1 %v3236_v29 }
 0x3ec   :  { %v1954_v12 = vadd.f32 %v1953_v60, %v3460_v41  ;;  %v1993_v13 = vadd.f32 %v3476_v35, %v1952_v61  ;;  %v2190_v24 = vrot.slane %v2685_v21, %v2189_v38  ;;  %2941 = vmatprep.subr.bf16.mxu1 %v3289_v11 }
 0x3ed   :  { %v1955_v62 = vpop.f32.mrf.mxu1 }
 0x3ee   :  { %v1995_v6 = vadd.f32 %v3478_v36, %v1954_v12 }
 0x3ef   :  { %v1956_v63 = vpop.f32.mrf.mxu1  ;;  %2942 = vmatpush3.bf16.msra.mxu1 %v3237_v39 }
 0x429   :  { %v2033_v14 = vpop.f32.mrf.mxu1 }
 0x42a   :  { %v2034_v15 = vadd.f32 %v2033_v14, %v1993_v13 }
 0x42b   :  { %v2035_v16 = vpop.f32.mrf.mxu1 }
 0x42c   :  { %v2036_v17 = vadd.f32 %v2035_v16, %v1995_v6 }
 0x42d   :  { %v2037_v18 = vpop.f32.mrf.mxu1 }
 0x42f   :  { %v2038_v19 = vpop.f32.mrf.mxu1 }
 0x470   :  { %v2171_v41 = vpop.f32.mrf.mxu0 }
 0x471   :  { %v2178_v23 = vadd.f32 %v2171_v41, %v2034_v15 }
 0x472   :  { %v2173_v25 = vpop.f32.mrf.mxu0 }
 0x473   :  { %v2193_v26 = vadd.f32 %v2186_v22, %v2178_v23  ;;  %v2179_v27 = vadd.f32 %v2173_v25, %v2036_v17 }
 0x474   :  { %v2175_v28 = vpop.f32.mrf.mxu0 }
 0x475   :  { %v2194_v30 = vadd.f32 %v2190_v24, %v2179_v27  ;;  %v2195_v31 = vmax.f32 %v2193_v26, 0.0 }
 0x476   :  { %v2176_v32 = vpop.f32.mrf.mxu0 }
 0x477   :  { %v2196_v33 = vmax.f32 %v2194_v30, 0.0  ;;  %v2229_v36 = vpack.c.bf16 %v2195_v31, %v2195_v31 }
 0x479   :  { %v2230_v35 = vpack.c.bf16 %v2196_v33, %v2196_v33 }
 0x47b   :  { %2360 = vmatprep.mubr.bf16.mxu0 %v2230_v35 }
 0x47c   :  { %2361 = vmatmul.mubr.bf16.vlgmr.msra.gmra.mxu0 %v2229_v36 }
 0x53c   :  { %v2814_v40 = vpop.f32.mrf.mxu0 }
 0x53e   :  { %v2815_v43 = vpop.f32.mrf.mxu0 }
 0x53f   :  { %v2816_v34 = vadd.f32 %v2815_v43, %v2814_v40 }
 0x540   :  { %v2817_v44 = vpop.f32.mrf.mxu0 }
 0x541   :  { %v2363_v45 = vadd.f32 %v2816_v34, %v2231_v42 }
 0x542   :  { %v2818_v46 = vpop.f32.mrf.mxu0 }
 0x543   :  { %v2368_v47 = vmax.f32 %v2363_v45, 0.0 }
 0x545   :  { %v2385_v48 = vpack.c.bf16 %v2368_v47, %v2368_v47 }
 0x547   :  { %2944 = vmatmul.mubr.bf16.vlgmr.msra.gmra.mxu1 %v2385_v48 }
 0x607   :  { %v2469_v11 = vpop.f32.mrf.mxu1 }
 0x608   :  { %v2470_v50 = vadd.f32 %v2469_v11, %v2386_v49 }
 0x609   :  { %v2945_v51 = vpop.f32.mrf.mxu1 }
 0x60a   :  { %2475 = vst [vmem:[%s3514_s6] sm:$0x3] %v2470_v50 }
 0x60b   :  { %v2472_v52 = vpop.f32.mrf.mxu1 }
 0x60d   :  { %v2946_v53 = vpop.f32.mrf.mxu1 }
 0x60e   :  { %2480 = vsyncpa [#allocation4], 1 }
 0x60f   :  { %2481 = vsyncpa [#allocation6], 1 }

</bundles_post_ra>
